<compile_context>
chip_gen: v6e
topology: v6e:2x2x1
jax: 0.10.0
libtpu: 0.0.40
codegen_flags: <defaults>
</compile_context>

<pallas_src>
import functools

import jax
import jax.numpy as jnp
from jax.experimental import pallas as pl
from jax.experimental.pallas import tpu as pltpu

KSIZE = 7
PAD = 3
EPS = 1e-5
ALIGN = 128          # lane-aligned scratch column where the payload starts
IM2COL_MAX_C = 128   # below this channel count, use the fused im2col matmul


def _instance_norm(a):
    # a: (C, L) f32.  One-pass statistics: var = E[x^2] - mean^2 (biased, as
    # in torch.nn.InstanceNorm1d), no affine.
    n = a.shape[1]
    inv_n = 1.0 / n
    s1 = jnp.sum(a, axis=1, keepdims=True)
    s2 = jnp.sum(a * a, axis=1, keepdims=True)
    mean = s1 * inv_n
    var = s2 * inv_n - mean * mean
    return (a - mean) * jax.lax.rsqrt(var + EPS)


def _resblock1d_kernel(x_ref, w1_ref, w2_ref, o_ref, pad_ref, *, use_im2col):
    # x_ref:   (1, C, L)   one batch item
    # w*_ref:  (C, 7*C)    im2col-flat weights           (use_im2col=True)
    #          (7, C, C)   per-tap (C_out, C_in) blocks  (use_im2col=False)
    # o_ref:   (1, C, L)
    # pad_ref: (C, ALIGN + L + PAD) VMEM scratch, reused by both convs.
    C = o_ref.shape[1]
    L = o_ref.shape[2]
    base = ALIGN - PAD  # scratch column holding padded-sequence position 0

    x = x_ref[0]  # (C, L) residual input

    def refl_pad_store(a):
        # ReflectionPad1d(3), PyTorch semantics:
        #   left = a[3], a[2], a[1];  right = a[L-2], a[L-3], a[L-4].
        # The payload store is lane-aligned (column ALIGN == 128); only the
        # six edge columns are one-lane masked stores.
        pad_ref[:, ALIGN:ALIGN + L] = a
        pad_ref[:, ALIGN - 3:ALIGN - 2] = a[:, 3:4]
        pad_ref[:, ALIGN - 2:ALIGN - 1] = a[:, 2:3]
        pad_ref[:, ALIGN - 1:ALIGN] = a[:, 1:2]
        pad_ref[:, ALIGN + L:ALIGN + L + 1] = a[:, L - 2:L - 1]
        pad_ref[:, ALIGN + L + 1:ALIGN + L + 2] = a[:, L - 3:L - 2]
        pad_ref[:, ALIGN + L + 2:ALIGN + L + 3] = a[:, L - 4:L - 3]

    if use_im2col:
        def conv7(w_ref):
            # Small C: one (C, 7C) @ (7C, L) matmul so the MXU sees a deep
            # contraction dim instead of seven shallow ones.
            cols = jnp.concatenate(
                [pad_ref[:, base + k:base + k + L] for k in range(KSIZE)],
                axis=0)
            return jnp.dot(w_ref[...], cols,
                           preferred_element_type=jnp.float32)
    else:
        def conv7(w_ref):
            # Large C: accumulate over the 7 taps.  No materialized im2col,
            # no (7C, L) VMEM operand; the MXU accumulates in place
            # (MRB on v7x, FIFO pops on v5e/v6e).
            acc = jnp.dot(w_ref[0], pad_ref[:, base:base + L],
                          preferred_element_type=jnp.float32)
            for k in range(1, KSIZE):  # static unroll
                acc = acc + jnp.dot(w_ref[k],
                                    pad_ref[:, base + k:base + k + L],
                                    preferred_element_type=jnp.float32)
            return acc

    # ---- ReflPad3 -> Conv1d(7) -> InstanceNorm -> ReLU ----
    # (conv bias omitted: it cancels exactly under affine-less InstanceNorm)
    refl_pad_store(x)
    h = jnp.maximum(_instance_norm(conv7(w1_ref)), 0.0)

    # ---- ReflPad3 -> Conv1d(7) -> InstanceNorm -> residual add ----
    refl_pad_store(h)
    o_ref[0] = x + _instance_norm(conv7(w2_ref))


def residual_block_1d(x, w1, b1, w2, b2):
    """x: (N, C, L) f32; w*: (C_out, C_in, 7) f32; b*: (C,) f32.

    b1/b2 are accepted for module fidelity but are mathematically a no-op
    (per-channel bias followed by affine-less InstanceNorm cancels), so they
    are not passed to the kernel.
    """
    del b1, b2
    N, C, L = x.shape
    assert L >= 4, "ReflectionPad1d(3) requires L >= 4"
    Wp = ALIGN + L + PAD
    use_im2col = C < IM2COL_MAX_C

    if use_im2col:
        # w_flat[o, k*C + i] = w[o, i, k] (matches the im2col concat rows).
        w1p = jnp.transpose(w1, (0, 2, 1)).reshape(C, KSIZE * C)
        w2p = jnp.transpose(w2, (0, 2, 1)).reshape(C, KSIZE * C)
        w_shape = (C, KSIZE * C)
        w_index = lambda n: (0, 0)
    else:
        # Native per-tap blocks: w_tap[k, o, i] = w[o, i, k].
        w1p = jnp.transpose(w1, (2, 0, 1))
        w2p = jnp.transpose(w2, (2, 0, 1))
        w_shape = (KSIZE, C, C)
        w_index = lambda n: (0, 0, 0)

    # Per-step VMEM working set (f32 bytes).  The two convs run sequentially,
    # so one conv's operands are counted (peak = max, not sum), and the
    # constant-index weights are counted single-buffered.
    per_conv = (KSIZE * C * L if use_im2col else 0) + 4 * C * L
    est_bytes = 4 * (
        2 * 2 * C * L            # x + out blocks, double-buffered pipeline
        + 2 * KSIZE * C * C      # w1 + w2, single-buffered
        + C * Wp                 # reflection-pad scratch
        + per_conv               # one conv's operands / live temporaries
    )
    try:
        vmem_cap = int(pltpu.get_tpu_info().vmem_capacity_bytes)
    except Exception:
        vmem_cap = 64 * 1024 * 1024  # conservative (v7x physical VMEM)
    vmem_limit = int(min(max(2 * est_bytes, 16 * 1024 * 1024),
                         (vmem_cap * 85) // 100))

    kernel = functools.partial(_resblock1d_kernel, use_im2col=use_im2col)

    def _call(weight_spec):
        return pl.pallas_call(
            kernel,
            out_shape=jax.ShapeDtypeStruct((N, C, L), jnp.float32),
            grid_spec=pltpu.PrefetchScalarGridSpec(
                num_scalar_prefetch=0,
                grid=(N,),
                in_specs=[
                    pl.BlockSpec((1, C, L), lambda n: (n, 0, 0)),  # x
                    weight_spec,                                    # w1
                    weight_spec,                                    # w2
                ],
                out_specs=pl.BlockSpec((1, C, L), lambda n: (n, 0, 0)),
                scratch_shapes=[pltpu.VMEM((C, Wp), jnp.float32)],
            ),
            compiler_params=pltpu.CompilerParams(
                dimension_semantics=("parallel",),  # megacore shards batch
                vmem_limit_bytes=vmem_limit,
            ),
        )(x, w1p, w2p)

    try:
        # Constant index_map -> a single VMEM buffer per weight suffices.
        return _call(pl.BlockSpec(w_shape, w_index,
                                  pipeline_mode=pl.Buffered(1)))
    except Exception:
        # Fallback for builds where Buffered(1) is not supported on the outer
        # grid; weights are then (redundantly) double-buffered but still only
        # DMA'd once thanks to the constant index_map.
        return _call(pl.BlockSpec(w_shape, w_index))
    # TODO(synk): when C*L outgrows v7x's 64 MiB VMEM, tile over L inside the
    # step (pltpu.emit_pipeline over L slabs) with running sum/sum-sq
    # instance-norm statistics instead of full (C, L+6) resident slabs.
    # TODO(synk): for tiny C/L (like the unit-test shape) pack several batch
    # items per grid step with C padded to 8 / L to 128 and a (C_in, Nb*L)
    # conv RHS so stores are lane-dense and per-step overhead is amortized.


def _reference(x, w1, b1, w2, b2):
    # Pure-JAX reference mirroring the PyTorch module (biases included here,
    # which also validates that dropping them in the kernel is exact).
    def conv_in_relu(inp, w, b, relu):
        p = jnp.pad(inp, ((0, 0), (0, 0), (PAD, PAD)), mode="reflect")
        y = jax.lax.conv_general_dilated(
            p, w, window_strides=(1,), padding="VALID",
            dimension_numbers=("NCH", "OIH", "NCH"))
        y = y + b[None, :, None]
        mean = jnp.mean(y, axis=2, keepdims=True)
        var = jnp.mean((y - mean) ** 2, axis=2, keepdims=True)
        y = (y - mean) / jnp.sqrt(var + EPS)
        return jnp.maximum(y, 0.0) if relu else y

    h = conv_in_relu(x, w1, b1, relu=True)
    z = conv_in_relu(h, w2, b2, relu=False)
    return x + z


if __name__ == "__main__":
    N, C, L = 2, 4, 16

    key = jax.random.PRNGKey(0)
    kx, kw1, kb1, kw2, kb2 = jax.random.split(key, 5)

    # Deterministic "PyTorch-like" init: U(-1/sqrt(fan_in), 1/sqrt(fan_in)).
    bound = 1.0 / jnp.sqrt(jnp.float32(C * KSIZE))
    x = jax.random.normal(kx, (N, C, L), dtype=jnp.float32)
    w1 = jax.random.uniform(kw1, (C, C, KSIZE), jnp.float32, -bound, bound)
    b1 = jax.random.uniform(kb1, (C,), jnp.float32, -bound, bound)
    w2 = jax.random.uniform(kw2, (C, C, KSIZE), jnp.float32, -bound, bound)
    b2 = jax.random.uniform(kb2, (C,), jnp.float32, -bound, bound)

    out = residual_block_1d(x, w1, b1, w2, b2)
    out = jax.block_until_ready(out)

    ref = _reference(x, w1, b1, w2, b2)
    assert out.shape == (N, C, L)
    assert bool(jnp.allclose(out, ref, atol=1e-4, rtol=1e-4)), "mismatch vs reference"

    print("KERNEL_OK")
</pallas_src>

<mosaic_0001>
module attributes {stable_mosaic.version = 11 : i64} {
  func.func @_resblock1d_kernel(%arg0: i32, %arg1: memref<1x4x16xf32, #tpu.memory_space<vmem>>, %arg2: memref<4x28xf32, #tpu.memory_space<vmem>>, %arg3: memref<4x28xf32, #tpu.memory_space<vmem>>, %arg4: memref<1x4x16xf32, #tpu.memory_space<vmem>>, %arg5: memref<4x147xf32, #tpu.memory_space<vmem>>) attributes {dimension_semantics = [#tpu.dimension_semantics<parallel>], iteration_bounds = array<i64: 2>, scalar_prefetch = 0 : i64, scratch_operands = 1 : i64, tpu.core_type = #tpu.core_type<tc>, window_params = [{transform_indices = @transform_0, window_bounds = array<i64: 1, 4, 16>}, {pipeline_mode = #tpu.pipeline_mode<synchronous>, transform_indices = @transform_1, window_bounds = array<i64: 4, 28>}, {pipeline_mode = #tpu.pipeline_mode<synchronous>, transform_indices = @transform_2, window_bounds = array<i64: 4, 28>}, {transform_indices = @transform_3, window_bounds = array<i64: 1, 4, 16>}]} {
    %c0 = arith.constant 0 : index
    %c0_0 = arith.constant 0 : index
    %c0_1 = arith.constant 0 : index
    %0 = vector.load %arg1[%c0, %c0_0, %c0_1] : memref<1x4x16xf32, #tpu.memory_space<vmem>>, vector<1x4x16xf32>
    %1 = vector.shape_cast %0 : vector<1x4x16xf32> to vector<4x16xf32>
    %c0_2 = arith.constant 0 : index
    %c128 = arith.constant 128 : index
    %2 = vector.load %arg5[%c0_2, %c128] : memref<4x147xf32, #tpu.memory_space<vmem>>, vector<4x16xf32>
    tpu.vector_store %arg5[%c0_2, %c128], %1 {strides = array<i32>} : memref<4x147xf32, #tpu.memory_space<vmem>>, vector<4x16xf32>,
    %3 = vector.extract_strided_slice %1 {offsets = [0, 3], sizes = [4, 1], strides = [1, 1]} : vector<4x16xf32> to vector<4x1xf32>
    %c0_3 = arith.constant 0 : index
    %c125 = arith.constant 125 : index
    %4 = vector.load %arg5[%c0_3, %c125] : memref<4x147xf32, #tpu.memory_space<vmem>>, vector<4x1xf32>
    tpu.vector_store %arg5[%c0_3, %c125], %3 {strides = array<i32>} : memref<4x147xf32, #tpu.memory_space<vmem>>, vector<4x1xf32>,
    %5 = vector.extract_strided_slice %1 {offsets = [0, 2], sizes = [4, 1], strides = [1, 1]} : vector<4x16xf32> to vector<4x1xf32>
    %c0_4 = arith.constant 0 : index
    %c126 = arith.constant 126 : index
    %6 = vector.load %arg5[%c0_4, %c126] : memref<4x147xf32, #tpu.memory_space<vmem>>, vector<4x1xf32>
    tpu.vector_store %arg5[%c0_4, %c126], %5 {strides = array<i32>} : memref<4x147xf32, #tpu.memory_space<vmem>>, vector<4x1xf32>,
    %7 = vector.extract_strided_slice %1 {offsets = [0, 1], sizes = [4, 1], strides = [1, 1]} : vector<4x16xf32> to vector<4x1xf32>
    %c0_5 = arith.constant 0 : index
    %c127 = arith.constant 127 : index
    %8 = vector.load %arg5[%c0_5, %c127] : memref<4x147xf32, #tpu.memory_space<vmem>>, vector<4x1xf32>
    tpu.vector_store %arg5[%c0_5, %c127], %7 {strides = array<i32>} : memref<4x147xf32, #tpu.memory_space<vmem>>, vector<4x1xf32>,
    %9 = vector.extract_strided_slice %1 {offsets = [0, 14], sizes = [4, 1], strides = [1, 1]} : vector<4x16xf32> to vector<4x1xf32>
    %c0_6 = arith.constant 0 : index
    %c144 = arith.constant 144 : index
    %10 = vector.load %arg5[%c0_6, %c144] : memref<4x147xf32, #tpu.memory_space<vmem>>, vector<4x1xf32>
    tpu.vector_store %arg5[%c0_6, %c144], %9 {strides = array<i32>} : memref<4x147xf32, #tpu.memory_space<vmem>>, vector<4x1xf32>,
    %11 = vector.extract_strided_slice %1 {offsets = [0, 13], sizes = [4, 1], strides = [1, 1]} : vector<4x16xf32> to vector<4x1xf32>
    %c0_7 = arith.constant 0 : index
    %c145 = arith.constant 145 : index
    %12 = vector.load %arg5[%c0_7, %c145] : memref<4x147xf32, #tpu.memory_space<vmem>>, vector<4x1xf32>
    tpu.vector_store %arg5[%c0_7, %c145], %11 {strides = array<i32>} : memref<4x147xf32, #tpu.memory_space<vmem>>, vector<4x1xf32>,
    %13 = vector.extract_strided_slice %1 {offsets = [0, 12], sizes = [4, 1], strides = [1, 1]} : vector<4x16xf32> to vector<4x1xf32>
    %c0_8 = arith.constant 0 : index
    %c146 = arith.constant 146 : index
    %14 = vector.load %arg5[%c0_8, %c146] : memref<4x147xf32, #tpu.memory_space<vmem>>, vector<4x1xf32>
    tpu.vector_store %arg5[%c0_8, %c146], %13 {strides = array<i32>} : memref<4x147xf32, #tpu.memory_space<vmem>>, vector<4x1xf32>,
    %c0_9 = arith.constant 0 : index
    %c125_10 = arith.constant 125 : index
    %15 = vector.load %arg5[%c0_9, %c125_10] : memref<4x147xf32, #tpu.memory_space<vmem>>, vector<4x16xf32>
    %c0_11 = arith.constant 0 : index
    %c126_12 = arith.constant 126 : index
    %16 = vector.load %arg5[%c0_11, %c126_12] : memref<4x147xf32, #tpu.memory_space<vmem>>, vector<4x16xf32>
    %c0_13 = arith.constant 0 : index
    %c127_14 = arith.constant 127 : index
    %17 = vector.load %arg5[%c0_13, %c127_14] : memref<4x147xf32, #tpu.memory_space<vmem>>, vector<4x16xf32>
    %c0_15 = arith.constant 0 : index
    %c128_16 = arith.constant 128 : index
    %18 = vector.load %arg5[%c0_15, %c128_16] : memref<4x147xf32, #tpu.memory_space<vmem>>, vector<4x16xf32>
    %c0_17 = arith.constant 0 : index
    %c129 = arith.constant 129 : index
    %19 = vector.load %arg5[%c0_17, %c129] : memref<4x147xf32, #tpu.memory_space<vmem>>, vector<4x16xf32>
    %c0_18 = arith.constant 0 : index
    %c130 = arith.constant 130 : index
    %20 = vector.load %arg5[%c0_18, %c130] : memref<4x147xf32, #tpu.memory_space<vmem>>, vector<4x16xf32>
    %c0_19 = arith.constant 0 : index
    %c131 = arith.constant 131 : index
    %21 = vector.load %arg5[%c0_19, %c131] : memref<4x147xf32, #tpu.memory_space<vmem>>, vector<4x16xf32>
    %22 = tpu.concatenate %15, %16, %17, %18, %19, %20, %21 in 0 : vector<4x16xf32>, vector<4x16xf32>, vector<4x16xf32>, vector<4x16xf32>, vector<4x16xf32>, vector<4x16xf32>, vector<4x16xf32> -> vector<28x16xf32>
    %c0_20 = arith.constant 0 : index
    %c0_21 = arith.constant 0 : index
    %23 = vector.load %arg2[%c0_20, %c0_21] : memref<4x28xf32, #tpu.memory_space<vmem>>, vector<4x28xf32>
    %cst = arith.constant dense<0.000000e+00> : vector<4x16xf32>
    %24 = tpu.matmul %23, %22, %cst {dimension_numbers = #tpu.dot_dimension_numbers<[1], [0], [0], [1], [0, 0, 1, 1], [], []>} : vector<4x28xf32>, vector<28x16xf32>, vector<4x16xf32> -> vector<4x16xf32>
    %cst_22 = arith.constant dense<0.000000e+00> : vector<4xf32>
    %25 = vector.multi_reduction <add>, %24, %cst_22 [1] : vector<4x16xf32> to vector<4xf32>
    %26 = vector.shape_cast %25 : vector<4xf32> to vector<4x1xf32>
    %27 = arith.mulf %24, %24 : vector<4x16xf32>
    %cst_23 = arith.constant dense<0.000000e+00> : vector<4xf32>
    %28 = vector.multi_reduction <add>, %27, %cst_23 [1] : vector<4x16xf32> to vector<4xf32>
    %29 = vector.shape_cast %28 : vector<4xf32> to vector<4x1xf32>
    %cst_24 = arith.constant 6.250000e-02 : f32
    %30 = vector.broadcast %cst_24 : f32 to vector<4x1xf32>
    %31 = arith.mulf %26, %30 : vector<4x1xf32>
    %cst_25 = arith.constant 6.250000e-02 : f32
    %32 = vector.broadcast %cst_25 : f32 to vector<4x1xf32>
    %33 = arith.mulf %29, %32 : vector<4x1xf32>
    %34 = arith.mulf %31, %31 : vector<4x1xf32>
    %35 = arith.subf %33, %34 : vector<4x1xf32>
    %36 = vector.broadcast %31 : vector<4x1xf32> to vector<4x16xf32>
    %37 = arith.subf %24, %36 : vector<4x16xf32>
    %cst_26 = arith.constant 9.99999974E-6 : f32
    %38 = vector.broadcast %cst_26 : f32 to vector<4x1xf32>
    %39 = arith.addf %35, %38 : vector<4x1xf32>
    %40 = math.rsqrt %39 : vector<4x1xf32>
    %41 = vector.broadcast %40 : vector<4x1xf32> to vector<4x16xf32>
    %42 = arith.mulf %37, %41 : vector<4x16xf32>
    %cst_27 = arith.constant 0.000000e+00 : f32
    %43 = vector.broadcast %cst_27 : f32 to vector<4x16xf32>
    %44 = arith.maximumf %42, %43 : vector<4x16xf32>
    %c0_28 = arith.constant 0 : index
    %c128_29 = arith.constant 128 : index
    %45 = vector.load %arg5[%c0_28, %c128_29] : memref<4x147xf32, #tpu.memory_space<vmem>>, vector<4x16xf32>
    tpu.vector_store %arg5[%c0_28, %c128_29], %44 {strides = array<i32>} : memref<4x147xf32, #tpu.memory_space<vmem>>, vector<4x16xf32>,
    %46 = vector.extract_strided_slice %44 {offsets = [0, 3], sizes = [4, 1], strides = [1, 1]} : vector<4x16xf32> to vector<4x1xf32>
    %c0_30 = arith.constant 0 : index
    %c125_31 = arith.constant 125 : index
    %47 = vector.load %arg5[%c0_30, %c125_31] : memref<4x147xf32, #tpu.memory_space<vmem>>, vector<4x1xf32>
    tpu.vector_store %arg5[%c0_30, %c125_31], %46 {strides = array<i32>} : memref<4x147xf32, #tpu.memory_space<vmem>>, vector<4x1xf32>,
    %48 = vector.extract_strided_slice %44 {offsets = [0, 2], sizes = [4, 1], strides = [1, 1]} : vector<4x16xf32> to vector<4x1xf32>
    %c0_32 = arith.constant 0 : index
    %c126_33 = arith.constant 126 : index
    %49 = vector.load %arg5[%c0_32, %c126_33] : memref<4x147xf32, #tpu.memory_space<vmem>>, vector<4x1xf32>
    tpu.vector_store %arg5[%c0_32, %c126_33], %48 {strides = array<i32>} : memref<4x147xf32, #tpu.memory_space<vmem>>, vector<4x1xf32>,
    %50 = vector.extract_strided_slice %44 {offsets = [0, 1], sizes = [4, 1], strides = [1, 1]} : vector<4x16xf32> to vector<4x1xf32>
    %c0_34 = arith.constant 0 : index
    %c127_35 = arith.constant 127 : index
    %51 = vector.load %arg5[%c0_34, %c127_35] : memref<4x147xf32, #tpu.memory_space<vmem>>, vector<4x1xf32>
    tpu.vector_store %arg5[%c0_34, %c127_35], %50 {strides = array<i32>} : memref<4x147xf32, #tpu.memory_space<vmem>>, vector<4x1xf32>,
    %52 = vector.extract_strided_slice %44 {offsets = [0, 14], sizes = [4, 1], strides = [1, 1]} : vector<4x16xf32> to vector<4x1xf32>
    %c0_36 = arith.constant 0 : index
    %c144_37 = arith.constant 144 : index
    %53 = vector.load %arg5[%c0_36, %c144_37] : memref<4x147xf32, #tpu.memory_space<vmem>>, vector<4x1xf32>
    tpu.vector_store %arg5[%c0_36, %c144_37], %52 {strides = array<i32>} : memref<4x147xf32, #tpu.memory_space<vmem>>, vector<4x1xf32>,
    %54 = vector.extract_strided_slice %44 {offsets = [0, 13], sizes = [4, 1], strides = [1, 1]} : vector<4x16xf32> to vector<4x1xf32>
    %c0_38 = arith.constant 0 : index
    %c145_39 = arith.constant 145 : index
    %55 = vector.load %arg5[%c0_38, %c145_39] : memref<4x147xf32, #tpu.memory_space<vmem>>, vector<4x1xf32>
    tpu.vector_store %arg5[%c0_38, %c145_39], %54 {strides = array<i32>} : memref<4x147xf32, #tpu.memory_space<vmem>>, vector<4x1xf32>,
    %56 = vector.extract_strided_slice %44 {offsets = [0, 12], sizes = [4, 1], strides = [1, 1]} : vector<4x16xf32> to vector<4x1xf32>
    %c0_40 = arith.constant 0 : index
    %c146_41 = arith.constant 146 : index
    %57 = vector.load %arg5[%c0_40, %c146_41] : memref<4x147xf32, #tpu.memory_space<vmem>>, vector<4x1xf32>
    tpu.vector_store %arg5[%c0_40, %c146_41], %56 {strides = array<i32>} : memref<4x147xf32, #tpu.memory_space<vmem>>, vector<4x1xf32>,
    %c0_42 = arith.constant 0 : index
    %c125_43 = arith.constant 125 : index
    %58 = vector.load %arg5[%c0_42, %c125_43] : memref<4x147xf32, #tpu.memory_space<vmem>>, vector<4x16xf32>
    %c0_44 = arith.constant 0 : index
    %c126_45 = arith.constant 126 : index
    %59 = vector.load %arg5[%c0_44, %c126_45] : memref<4x147xf32, #tpu.memory_space<vmem>>, vector<4x16xf32>
    %c0_46 = arith.constant 0 : index
    %c127_47 = arith.constant 127 : index
    %60 = vector.load %arg5[%c0_46, %c127_47] : memref<4x147xf32, #tpu.memory_space<vmem>>, vector<4x16xf32>
    %c0_48 = arith.constant 0 : index
    %c128_49 = arith.constant 128 : index
    %61 = vector.load %arg5[%c0_48, %c128_49] : memref<4x147xf32, #tpu.memory_space<vmem>>, vector<4x16xf32>
    %c0_50 = arith.constant 0 : index
    %c129_51 = arith.constant 129 : index
    %62 = vector.load %arg5[%c0_50, %c129_51] : memref<4x147xf32, #tpu.memory_space<vmem>>, vector<4x16xf32>
    %c0_52 = arith.constant 0 : index
    %c130_53 = arith.constant 130 : index
    %63 = vector.load %arg5[%c0_52, %c130_53] : memref<4x147xf32, #tpu.memory_space<vmem>>, vector<4x16xf32>
    %c0_54 = arith.constant 0 : index
    %c131_55 = arith.constant 131 : index
    %64 = vector.load %arg5[%c0_54, %c131_55] : memref<4x147xf32, #tpu.memory_space<vmem>>, vector<4x16xf32>
    %65 = tpu.concatenate %58, %59, %60, %61, %62, %63, %64 in 0 : vector<4x16xf32>, vector<4x16xf32>, vector<4x16xf32>, vector<4x16xf32>, vector<4x16xf32>, vector<4x16xf32>, vector<4x16xf32> -> vector<28x16xf32>
    %c0_56 = arith.constant 0 : index
    %c0_57 = arith.constant 0 : index
    %66 = vector.load %arg3[%c0_56, %c0_57] : memref<4x28xf32, #tpu.memory_space<vmem>>, vector<4x28xf32>
    %cst_58 = arith.constant dense<0.000000e+00> : vector<4x16xf32>
    %67 = tpu.matmul %66, %65, %cst_58 {dimension_numbers = #tpu.dot_dimension_numbers<[1], [0], [0], [1], [0, 0, 1, 1], [], []>} : vector<4x28xf32>, vector<28x16xf32>, vector<4x16xf32> -> vector<4x16xf32>
    %cst_59 = arith.constant dense<0.000000e+00> : vector<4xf32>
    %68 = vector.multi_reduction <add>, %67, %cst_59 [1] : vector<4x16xf32> to vector<4xf32>
    %69 = vector.shape_cast %68 : vector<4xf32> to vector<4x1xf32>
    %70 = arith.mulf %67, %67 : vector<4x16xf32>
    %cst_60 = arith.constant dense<0.000000e+00> : vector<4xf32>
    %71 = vector.multi_reduction <add>, %70, %cst_60 [1] : vector<4x16xf32> to vector<4xf32>
    %72 = vector.shape_cast %71 : vector<4xf32> to vector<4x1xf32>
    %cst_61 = arith.constant 6.250000e-02 : f32
    %73 = vector.broadcast %cst_61 : f32 to vector<4x1xf32>
    %74 = arith.mulf %69, %73 : vector<4x1xf32>
    %cst_62 = arith.constant 6.250000e-02 : f32
    %75 = vector.broadcast %cst_62 : f32 to vector<4x1xf32>
    %76 = arith.mulf %72, %75 : vector<4x1xf32>
    %77 = arith.mulf %74, %74 : vector<4x1xf32>
    %78 = arith.subf %76, %77 : vector<4x1xf32>
    %79 = vector.broadcast %74 : vector<4x1xf32> to vector<4x16xf32>
    %80 = arith.subf %67, %79 : vector<4x16xf32>
    %cst_63 = arith.constant 9.99999974E-6 : f32
    %81 = vector.broadcast %cst_63 : f32 to vector<4x1xf32>
    %82 = arith.addf %78, %81 : vector<4x1xf32>
    %83 = math.rsqrt %82 : vector<4x1xf32>
    %84 = vector.broadcast %83 : vector<4x1xf32> to vector<4x16xf32>
    %85 = arith.mulf %80, %84 : vector<4x16xf32>
    %86 = arith.addf %1, %85 : vector<4x16xf32>
    %c0_64 = arith.constant 0 : index
    %c0_65 = arith.constant 0 : index
    %c0_66 = arith.constant 0 : index
    %87 = vector.load %arg4[%c0_64, %c0_65, %c0_66] : memref<1x4x16xf32, #tpu.memory_space<vmem>>, vector<1x4x16xf32>
    %88 = vector.shape_cast %87 : vector<1x4x16xf32> to vector<4x16xf32>
    %89 = vector.shape_cast %86 : vector<4x16xf32> to vector<1x4x16xf32>
    tpu.vector_store %arg4[%c0_64, %c0_65, %c0_66], %89 {strides = array<i32>} : memref<1x4x16xf32, #tpu.memory_space<vmem>>, vector<1x4x16xf32>,
    return
  }
  func.func @transform_0(%arg0: i32) -> (i32, i32, i32) {
    %c0_i32 = arith.constant 0 : i32
    %c0_i32_0 = arith.constant 0 : i32
    %c0_i32_1 = arith.constant 0 : i32
    return %arg0, %c0_i32, %c0_i32_0 : i32, i32, i32
  }
  func.func @transform_1(%arg0: i32) -> (i32, i32) {
    %c0_i32 = arith.constant 0 : i32
    %c0_i32_0 = arith.constant 0 : i32
    %c0_i32_1 = arith.constant 0 : i32
    return %c0_i32, %c0_i32_0 : i32, i32
  }
  func.func @transform_2(%arg0: i32) -> (i32, i32) {
    %c0_i32 = arith.constant 0 : i32
    %c0_i32_0 = arith.constant 0 : i32
    %c0_i32_1 = arith.constant 0 : i32
    return %c0_i32, %c0_i32_0 : i32, i32
  }
  func.func @transform_3(%arg0: i32) -> (i32, i32, i32) {
    %c0_i32 = arith.constant 0 : i32
    %c0_i32_0 = arith.constant 0 : i32
    %c0_i32_1 = arith.constant 0 : i32
    return %arg0, %c0_i32, %c0_i32_0 : i32, i32, i32
  }
}

module attributes {stable_mosaic.version = 11 : i64} {
  func.func @_resblock1d_kernel(%arg0: i32, %arg1: memref<1x4x16xf32, #tpu.memory_space<vmem>>, %arg2: memref<4x28xf32, #tpu.memory_space<vmem>>, %arg3: memref<4x28xf32, #tpu.memory_space<vmem>>, %arg4: memref<1x4x16xf32, #tpu.memory_space<vmem>>, %arg5: memref<4x147xf32, #tpu.memory_space<vmem>>) attributes {dimension_semantics = [#tpu.dimension_semantics<parallel>], iteration_bounds = array<i64: 2>, scalar_prefetch = 0 : i64, scratch_operands = 1 : i64, tpu.core_type = #tpu.core_type<tc>, window_params = [{transform_indices = @transform_0, window_bounds = array<i64: 1, 4, 16>}, {pipeline_mode = #tpu.pipeline_mode<synchronous>, transform_indices = @transform_1, window_bounds = array<i64: 4, 28>}, {pipeline_mode = #tpu.pipeline_mode<synchronous>, transform_indices = @transform_2, window_bounds = array<i64: 4, 28>}, {transform_indices = @transform_3, window_bounds = array<i64: 1, 4, 16>}]} {
    %c0 = arith.constant 0 : index
    %c0_0 = arith.constant 0 : index
    %c0_1 = arith.constant 0 : index
    %0 = vector.load %arg1[%c0, %c0_0, %c0_1] : memref<1x4x16xf32, #tpu.memory_space<vmem>>, vector<1x4x16xf32>
    %1 = vector.shape_cast %0 : vector<1x4x16xf32> to vector<4x16xf32>
    %c0_2 = arith.constant 0 : index
    %c128 = arith.constant 128 : index
    %2 = vector.load %arg5[%c0_2, %c128] : memref<4x147xf32, #tpu.memory_space<vmem>>, vector<4x16xf32>
    tpu.vector_store %arg5[%c0_2, %c128], %1 {strides = array<i32>} : memref<4x147xf32, #tpu.memory_space<vmem>>, vector<4x16xf32>,
    %3 = vector.extract_strided_slice %1 {offsets = [0, 3], sizes = [4, 1], strides = [1, 1]} : vector<4x16xf32> to vector<4x1xf32>
    %c0_3 = arith.constant 0 : index
    %c125 = arith.constant 125 : index
    %4 = vector.load %arg5[%c0_3, %c125] : memref<4x147xf32, #tpu.memory_space<vmem>>, vector<4x1xf32>
    tpu.vector_store %arg5[%c0_3, %c125], %3 {strides = array<i32>} : memref<4x147xf32, #tpu.memory_space<vmem>>, vector<4x1xf32>,
    %5 = vector.extract_strided_slice %1 {offsets = [0, 2], sizes = [4, 1], strides = [1, 1]} : vector<4x16xf32> to vector<4x1xf32>
    %c0_4 = arith.constant 0 : index
    %c126 = arith.constant 126 : index
    %6 = vector.load %arg5[%c0_4, %c126] : memref<4x147xf32, #tpu.memory_space<vmem>>, vector<4x1xf32>
    tpu.vector_store %arg5[%c0_4, %c126], %5 {strides = array<i32>} : memref<4x147xf32, #tpu.memory_space<vmem>>, vector<4x1xf32>,
    %7 = vector.extract_strided_slice %1 {offsets = [0, 1], sizes = [4, 1], strides = [1, 1]} : vector<4x16xf32> to vector<4x1xf32>
    %c0_5 = arith.constant 0 : index
    %c127 = arith.constant 127 : index
    %8 = vector.load %arg5[%c0_5, %c127] : memref<4x147xf32, #tpu.memory_space<vmem>>, vector<4x1xf32>
    tpu.vector_store %arg5[%c0_5, %c127], %7 {strides = array<i32>} : memref<4x147xf32, #tpu.memory_space<vmem>>, vector<4x1xf32>,
    %9 = vector.extract_strided_slice %1 {offsets = [0, 14], sizes = [4, 1], strides = [1, 1]} : vector<4x16xf32> to vector<4x1xf32>
    %c0_6 = arith.constant 0 : index
    %c144 = arith.constant 144 : index
    %10 = vector.load %arg5[%c0_6, %c144] : memref<4x147xf32, #tpu.memory_space<vmem>>, vector<4x1xf32>
    tpu.vector_store %arg5[%c0_6, %c144], %9 {strides = array<i32>} : memref<4x147xf32, #tpu.memory_space<vmem>>, vector<4x1xf32>,
    %11 = vector.extract_strided_slice %1 {offsets = [0, 13], sizes = [4, 1], strides = [1, 1]} : vector<4x16xf32> to vector<4x1xf32>
    %c0_7 = arith.constant 0 : index
    %c145 = arith.constant 145 : index
    %12 = vector.load %arg5[%c0_7, %c145] : memref<4x147xf32, #tpu.memory_space<vmem>>, vector<4x1xf32>
    tpu.vector_store %arg5[%c0_7, %c145], %11 {strides = array<i32>} : memref<4x147xf32, #tpu.memory_space<vmem>>, vector<4x1xf32>,
    %13 = vector.extract_strided_slice %1 {offsets = [0, 12], sizes = [4, 1], strides = [1, 1]} : vector<4x16xf32> to vector<4x1xf32>
    %c0_8 = arith.constant 0 : index
    %c146 = arith.constant 146 : index
    %14 = vector.load %arg5[%c0_8, %c146] : memref<4x147xf32, #tpu.memory_space<vmem>>, vector<4x1xf32>
    tpu.vector_store %arg5[%c0_8, %c146], %13 {strides = array<i32>} : memref<4x147xf32, #tpu.memory_space<vmem>>, vector<4x1xf32>,
    %c0_9 = arith.constant 0 : index
    %c125_10 = arith.constant 125 : index
    %15 = vector.load %arg5[%c0_9, %c125_10] : memref<4x147xf32, #tpu.memory_space<vmem>>, vector<4x16xf32>
    %c0_11 = arith.constant 0 : index
    %c126_12 = arith.constant 126 : index
    %16 = vector.load %arg5[%c0_11, %c126_12] : memref<4x147xf32, #tpu.memory_space<vmem>>, vector<4x16xf32>
    %c0_13 = arith.constant 0 : index
    %c127_14 = arith.constant 127 : index
    %17 = vector.load %arg5[%c0_13, %c127_14] : memref<4x147xf32, #tpu.memory_space<vmem>>, vector<4x16xf32>
    %c0_15 = arith.constant 0 : index
    %c128_16 = arith.constant 128 : index
    %18 = vector.load %arg5[%c0_15, %c128_16] : memref<4x147xf32, #tpu.memory_space<vmem>>, vector<4x16xf32>
    %c0_17 = arith.constant 0 : index
    %c129 = arith.constant 129 : index
    %19 = vector.load %arg5[%c0_17, %c129] : memref<4x147xf32, #tpu.memory_space<vmem>>, vector<4x16xf32>
    %c0_18 = arith.constant 0 : index
    %c130 = arith.constant 130 : index
    %20 = vector.load %arg5[%c0_18, %c130] : memref<4x147xf32, #tpu.memory_space<vmem>>, vector<4x16xf32>
    %c0_19 = arith.constant 0 : index
    %c131 = arith.constant 131 : index
    %21 = vector.load %arg5[%c0_19, %c131] : memref<4x147xf32, #tpu.memory_space<vmem>>, vector<4x16xf32>
    %22 = tpu.concatenate %15, %16, %17, %18, %19, %20, %21 in 0 : vector<4x16xf32>, vector<4x16xf32>, vector<4x16xf32>, vector<4x16xf32>, vector<4x16xf32>, vector<4x16xf32>, vector<4x16xf32> -> vector<28x16xf32>
    %c0_20 = arith.constant 0 : index
    %c0_21 = arith.constant 0 : index
    %23 = vector.load %arg2[%c0_20, %c0_21] : memref<4x28xf32, #tpu.memory_space<vmem>>, vector<4x28xf32>
    %cst = arith.constant dense<0.000000e+00> : vector<4x16xf32>
    %24 = tpu.matmul %23, %22, %cst {dimension_numbers = #tpu.dot_dimension_numbers<[1], [0], [0], [1], [0, 0, 1, 1], [], []>} : vector<4x28xf32>, vector<28x16xf32>, vector<4x16xf32> -> vector<4x16xf32>
    %cst_22 = arith.constant dense<0.000000e+00> : vector<4xf32>
    %25 = vector.multi_reduction <add>, %24, %cst_22 [1] : vector<4x16xf32> to vector<4xf32>
    %26 = vector.shape_cast %25 : vector<4xf32> to vector<4x1xf32>
    %27 = arith.mulf %24, %24 : vector<4x16xf32>
    %cst_23 = arith.constant dense<0.000000e+00> : vector<4xf32>
    %28 = vector.multi_reduction <add>, %27, %cst_23 [1] : vector<4x16xf32> to vector<4xf32>
    %29 = vector.shape_cast %28 : vector<4xf32> to vector<4x1xf32>
    %cst_24 = arith.constant 6.250000e-02 : f32
    %30 = vector.broadcast %cst_24 : f32 to vector<4x1xf32>
    %31 = arith.mulf %26, %30 : vector<4x1xf32>
    %cst_25 = arith.constant 6.250000e-02 : f32
    %32 = vector.broadcast %cst_25 : f32 to vector<4x1xf32>
    %33 = arith.mulf %29, %32 : vector<4x1xf32>
    %34 = arith.mulf %31, %31 : vector<4x1xf32>
    %35 = arith.subf %33, %34 : vector<4x1xf32>
    %36 = vector.broadcast %31 : vector<4x1xf32> to vector<4x16xf32>
    %37 = arith.subf %24, %36 : vector<4x16xf32>
    %cst_26 = arith.constant 9.99999974E-6 : f32
    %38 = vector.broadcast %cst_26 : f32 to vector<4x1xf32>
    %39 = arith.addf %35, %38 : vector<4x1xf32>
    %40 = math.rsqrt %39 : vector<4x1xf32>
    %41 = vector.broadcast %40 : vector<4x1xf32> to vector<4x16xf32>
    %42 = arith.mulf %37, %41 : vector<4x16xf32>
    %cst_27 = arith.constant 0.000000e+00 : f32
    %43 = vector.broadcast %cst_27 : f32 to vector<4x16xf32>
    %44 = arith.maximumf %42, %43 : vector<4x16xf32>
    %c0_28 = arith.constant 0 : index
    %c128_29 = arith.constant 128 : index
    %45 = vector.load %arg5[%c0_28, %c128_29] : memref<4x147xf32, #tpu.memory_space<vmem>>, vector<4x16xf32>
    tpu.vector_store %arg5[%c0_28, %c128_29], %44 {strides = array<i32>} : memref<4x147xf32, #tpu.memory_space<vmem>>, vector<4x16xf32>,
    %46 = vector.extract_strided_slice %44 {offsets = [0, 3], sizes = [4, 1], strides = [1, 1]} : vector<4x16xf32> to vector<4x1xf32>
    %c0_30 = arith.constant 0 : index
    %c125_31 = arith.constant 125 : index
    %47 = vector.load %arg5[%c0_30, %c125_31] : memref<4x147xf32, #tpu.memory_space<vmem>>, vector<4x1xf32>
    tpu.vector_store %arg5[%c0_30, %c125_31], %46 {strides = array<i32>} : memref<4x147xf32, #tpu.memory_space<vmem>>, vector<4x1xf32>,
    %48 = vector.extract_strided_slice %44 {offsets = [0, 2], sizes = [4, 1], strides = [1, 1]} : vector<4x16xf32> to vector<4x1xf32>
    %c0_32 = arith.constant 0 : index
    %c126_33 = arith.constant 126 : index
    %49 = vector.load %arg5[%c0_32, %c126_33] : memref<4x147xf32, #tpu.memory_space<vmem>>, vector<4x1xf32>
    tpu.vector_store %arg5[%c0_32, %c126_33], %48 {strides = array<i32>} : memref<4x147xf32, #tpu.memory_space<vmem>>, vector<4x1xf32>,
    %50 = vector.extract_strided_slice %44 {offsets = [0, 1], sizes = [4, 1], strides = [1, 1]} : vector<4x16xf32> to vector<4x1xf32>
    %c0_34 = arith.constant 0 : index
    %c127_35 = arith.constant 127 : index
    %51 = vector.load %arg5[%c0_34, %c127_35] : memref<4x147xf32, #tpu.memory_space<vmem>>, vector<4x1xf32>
    tpu.vector_store %arg5[%c0_34, %c127_35], %50 {strides = array<i32>} : memref<4x147xf32, #tpu.memory_space<vmem>>, vector<4x1xf32>,
    %52 = vector.extract_strided_slice %44 {offsets = [0, 14], sizes = [4, 1], strides = [1, 1]} : vector<4x16xf32> to vector<4x1xf32>
    %c0_36 = arith.constant 0 : index
    %c144_37 = arith.constant 144 : index
    %53 = vector.load %arg5[%c0_36, %c144_37] : memref<4x147xf32, #tpu.memory_space<vmem>>, vector<4x1xf32>
    tpu.vector_store %arg5[%c0_36, %c144_37], %52 {strides = array<i32>} : memref<4x147xf32, #tpu.memory_space<vmem>>, vector<4x1xf32>,
    %54 = vector.extract_strided_slice %44 {offsets = [0, 13], sizes = [4, 1], strides = [1, 1]} : vector<4x16xf32> to vector<4x1xf32>
    %c0_38 = arith.constant 0 : index
    %c145_39 = arith.constant 145 : index
    %55 = vector.load %arg5[%c0_38, %c145_39] : memref<4x147xf32, #tpu.memory_space<vmem>>, vector<4x1xf32>
    tpu.vector_store %arg5[%c0_38, %c145_39], %54 {strides = array<i32>} : memref<4x147xf32, #tpu.memory_space<vmem>>, vector<4x1xf32>,
    %56 = vector.extract_strided_slice %44 {offsets = [0, 12], sizes = [4, 1], strides = [1, 1]} : vector<4x16xf32> to vector<4x1xf32>
    %c0_40 = arith.constant 0 : index
    %c146_41 = arith.constant 146 : index
    %57 = vector.load %arg5[%c0_40, %c146_41] : memref<4x147xf32, #tpu.memory_space<vmem>>, vector<4x1xf32>
    tpu.vector_store %arg5[%c0_40, %c146_41], %56 {strides = array<i32>} : memref<4x147xf32, #tpu.memory_space<vmem>>, vector<4x1xf32>,
    %c0_42 = arith.constant 0 : index
    %c125_43 = arith.constant 125 : index
    %58 = vector.load %arg5[%c0_42, %c125_43] : memref<4x147xf32, #tpu.memory_space<vmem>>, vector<4x16xf32>
    %c0_44 = arith.constant 0 : index
    %c126_45 = arith.constant 126 : index
    %59 = vector.load %arg5[%c0_44, %c126_45] : memref<4x147xf32, #tpu.memory_space<vmem>>, vector<4x16xf32>
    %c0_46 = arith.constant 0 : index
    %c127_47 = arith.constant 127 : index
    %60 = vector.load %arg5[%c0_46, %c127_47] : memref<4x147xf32, #tpu.memory_space<vmem>>, vector<4x16xf32>
    %c0_48 = arith.constant 0 : index
    %c128_49 = arith.constant 128 : index
    %61 = vector.load %arg5[%c0_48, %c128_49] : memref<4x147xf32, #tpu.memory_space<vmem>>, vector<4x16xf32>
    %c0_50 = arith.constant 0 : index
    %c129_51 = arith.constant 129 : index
    %62 = vector.load %arg5[%c0_50, %c129_51] : memref<4x147xf32, #tpu.memory_space<vmem>>, vector<4x16xf32>
    %c0_52 = arith.constant 0 : index
    %c130_53 = arith.constant 130 : index
    %63 = vector.load %arg5[%c0_52, %c130_53] : memref<4x147xf32, #tpu.memory_space<vmem>>, vector<4x16xf32>
    %c0_54 = arith.constant 0 : index
    %c131_55 = arith.constant 131 : index
    %64 = vector.load %arg5[%c0_54, %c131_55] : memref<4x147xf32, #tpu.memory_space<vmem>>, vector<4x16xf32>
    %65 = tpu.concatenate %58, %59, %60, %61, %62, %63, %64 in 0 : vector<4x16xf32>, vector<4x16xf32>, vector<4x16xf32>, vector<4x16xf32>, vector<4x16xf32>, vector<4x16xf32>, vector<4x16xf32> -> vector<28x16xf32>
    %c0_56 = arith.constant 0 : index
    %c0_57 = arith.constant 0 : index
    %66 = vector.load %arg3[%c0_56, %c0_57] : memref<4x28xf32, #tpu.memory_space<vmem>>, vector<4x28xf32>
    %cst_58 = arith.constant dense<0.000000e+00> : vector<4x16xf32>
    %67 = tpu.matmul %66, %65, %cst_58 {dimension_numbers = #tpu.dot_dimension_numbers<[1], [0], [0], [1], [0, 0, 1, 1], [], []>} : vector<4x28xf32>, vector<28x16xf32>, vector<4x16xf32> -> vector<4x16xf32>
    %cst_59 = arith.constant dense<0.000000e+00> : vector<4xf32>
    %68 = vector.multi_reduction <add>, %67, %cst_59 [1] : vector<4x16xf32> to vector<4xf32>
    %69 = vector.shape_cast %68 : vector<4xf32> to vector<4x1xf32>
    %70 = arith.mulf %67, %67 : vector<4x16xf32>
    %cst_60 = arith.constant dense<0.000000e+00> : vector<4xf32>
    %71 = vector.multi_reduction <add>, %70, %cst_60 [1] : vector<4x16xf32> to vector<4xf32>
    %72 = vector.shape_cast %71 : vector<4xf32> to vector<4x1xf32>
    %cst_61 = arith.constant 6.250000e-02 : f32
    %73 = vector.broadcast %cst_61 : f32 to vector<4x1xf32>
    %74 = arith.mulf %69, %73 : vector<4x1xf32>
    %cst_62 = arith.constant 6.250000e-02 : f32
    %75 = vector.broadcast %cst_62 : f32 to vector<4x1xf32>
    %76 = arith.mulf %72, %75 : vector<4x1xf32>
    %77 = arith.mulf %74, %74 : vector<4x1xf32>
    %78 = arith.subf %76, %77 : vector<4x1xf32>
    %79 = vector.broadcast %74 : vector<4x1xf32> to vector<4x16xf32>
    %80 = arith.subf %67, %79 : vector<4x16xf32>
    %cst_63 = arith.constant 9.99999974E-6 : f32
    %81 = vector.broadcast %cst_63 : f32 to vector<4x1xf32>
    %82 = arith.addf %78, %81 : vector<4x1xf32>
    %83 = math.rsqrt %82 : vector<4x1xf32>
    %84 = vector.broadcast %83 : vector<4x1xf32> to vector<4x16xf32>
    %85 = arith.mulf %80, %84 : vector<4x16xf32>
    %86 = arith.addf %1, %85 : vector<4x16xf32>
    %c0_64 = arith.constant 0 : index
    %c0_65 = arith.constant 0 : index
    %c0_66 = arith.constant 0 : index
    %87 = vector.load %arg4[%c0_64, %c0_65, %c0_66] : memref<1x4x16xf32, #tpu.memory_space<vmem>>, vector<1x4x16xf32>
    %88 = vector.shape_cast %87 : vector<1x4x16xf32> to vector<4x16xf32>
    %89 = vector.shape_cast %86 : vector<4x16xf32> to vector<1x4x16xf32>
    tpu.vector_store %arg4[%c0_64, %c0_65, %c0_66], %89 {strides = array<i32>} : memref<1x4x16xf32, #tpu.memory_space<vmem>>, vector<1x4x16xf32>,
    return
  }
  func.func @transform_0(%arg0: i32) -> (i32, i32, i32) {
    %c0_i32 = arith.constant 0 : i32
    %c0_i32_0 = arith.constant 0 : i32
    %c0_i32_1 = arith.constant 0 : i32
    return %arg0, %c0_i32, %c0_i32_0 : i32, i32, i32
  }
  func.func @transform_1(%arg0: i32) -> (i32, i32) {
    %c0_i32 = arith.constant 0 : i32
    %c0_i32_0 = arith.constant 0 : i32
    %c0_i32_1 = arith.constant 0 : i32
    return %c0_i32, %c0_i32_0 : i32, i32
  }
  func.func @transform_2(%arg0: i32) -> (i32, i32) {
    %c0_i32 = arith.constant 0 : i32
    %c0_i32_0 = arith.constant 0 : i32
    %c0_i32_1 = arith.constant 0 : i32
    return %c0_i32, %c0_i32_0 : i32, i32
  }
  func.func @transform_3(%arg0: i32) -> (i32, i32, i32) {
    %c0_i32 = arith.constant 0 : i32
    %c0_i32_0 = arith.constant 0 : i32
    %c0_i32_1 = arith.constant 0 : i32
    return %arg0, %c0_i32, %c0_i32_0 : i32, i32, i32
  }
}

</mosaic_0001>

<bundles_post_ra>
// kernel: tpu_custom_call.1
= control target key start
LH: loop header
LB: loop body
LE: loop exit
PB: predicated region body
PF: predicated region fallthrough
CT: control target
= control target key end

     0   :  { %8 = vsyncpa [#allocation4], 0  ;;  %s1281_s0 = inlined_call_operand.hbm [shape: f32[2,4,16], index: 0, kind: input, shape index: {}]   ;;  %s1282_s1 = inlined_call_operand.hbm [shape: f32[4,28], index: 1, kind: input, shape index: {}]   ;;  %s1283_s2 = inlined_call_operand.hbm [shape: f32[4,28], index: 2, kind: input, shape index: {}]   ;;  %s1284_s3 = inlined_call_operand.hbm [shape: f32[2,4,16], index: 3, kind: output, shape index: {}]  }
   0x1   :  { %10 = vsyncpa [#allocation4 + $0x1], 0 }
   0x2   :  { %11 = vsyncpa [#allocation7], 0 }
   0x3   :  { %12 = vsyncpa [#allocation5], 0 }
   0x4   :  { %14 = vsyncpa [#allocation5 + $0x1], 0  ;;  %s1011_s12 = smov 0   ;;  %s1013_s13 = smov 0  }
   0x5   :  { %s1015_s14 = smov 0   ;;  %s1017_s15 = smov 0  }
   0x6 LB: > { %s1032_s16 = sadd.s32 4294967295, %s973_s15   ;;  %s684_s17 = sadd.s32 4294967294, %s973_s15   ;;  %s973_s15 = sphi %s1017_s15, %s1306_s15   ;;  %s969_s14 = sphi %s1015_s14, %s1305_s14   ;;  %s965_s13 = sphi %s1013_s13, %s1304_s13   ;;  %s961_s12 = sphi %s1011_s12, %s1303_s12  }
   0x7   : > { %p40_p0 = scmp.ne.s32.totalorder %s965_s13, %s961_s12  ;;  %p1285_p1 = scmp.eq.s32.totalorder %s1032_s16, 0 }
   0x8   : > { %p112_p3 = scmp.eq.s32.totalorder %s684_s17, 1  ;;  %p685_p5 = scmp.ge.s32.totalorder %s973_s15, 1 }
   0x9   : > { %p1041_p4 = por %p1285_p1, %p40_p0  ;;  %p119_p7 = scmp.lt.s32.totalorder %s973_s15, 3 }
   0xa   : > { %p1046_p6 = por %p112_p3, %p40_p0  ;;  %s975_s21 = smov [#allocation6]  }
   0xb   : > { %s1289_s18 = scalar_select %p1041_p4, 1, 0 }
   0xc   : > { %s1290_s19 = scalar_select %p1046_p6, 1, 0 }
   0xd   : > { %p1051_p8 = pnand %p685_p5, %p119_p7  ;;  %s132_s22 = sshll.u32 %s975_s21, 4  ;;  %s133_s22 = int_to_ptr.vmem [resolvable:$true] %s132_s22 }
   0xe   : > { %s976_s23 = smov [#allocation8]   ;;  %s1065_s26 = sadd.s32 1, %s973_s15  }
   0xf   : > { %s1291_s20 = scalar_select %p1051_p8, 1, 0 }
  0x10   : > { %p748_p10 = pneg %p1051_p8  ;;  %s143_s24 = sshll.u32 %s976_s23, 4  ;;  %s144_s24 = int_to_ptr.vmem [resolvable:$true] %s143_s24 }
  0x11   : > { %s24_s27 = ssub.s32 %s973_s15, %s1065_s26  ;;  %s836_s28 = scalar_lea.vmem %s133_s22, 64 }
  0x12   : > { %p1060_p11 = pnand %p748_p10, %p1285_p1  ;;  %p837_p13 = scmp.ne.s32.totalorder %s133_s22, %s836_s28 }
  0x13   : > { %p844_p5 = scmp.lt.s32.totalorder %s133_s22, %s133_s22  ;;  %p845_p7 = scmp.lt.s32.totalorder %s836_s28, %s836_s28 }
  0x14   : > { %p827_p12 = pneg %p1060_p11 }
  0x15   : > { %p846_p10 = por %p845_p7, %p844_p5 }
  0x16   : > { %p839_p0 = pnand %p837_p13, %p827_p12 }
  0x18   : > { %p840_p3 = pneg %p839_p0 }
  0x1a   : > { %p847_p9 = pnand %p846_p10, %p840_p3 }
  0x1c   : > { %850 = shalt.err (!%p847_p9)
}
  0x1d   : > { %751 = dma.hbm_to_vmem [thread:$0]  (!%p1060_p11), %s1282_s1, 64, %s133_s22, [#allocation7]  }
  0x1e   : > { %s862_s4 = scalar_lea.vmem %s144_s24, 64  ;;  %p870_p13 = scmp.lt.s32.totalorder %s144_s24, %s144_s24 }
  0x1f   : > { %p863_p1 = scmp.ne.s32.totalorder %s144_s24, %s862_s4  ;;  %p871_p0 = scmp.lt.s32.totalorder %s862_s4, %s862_s4 }
  0x21   : > { %p865_p2 = pnand %p863_p1, %p827_p12  ;;  %p872_p4 = por %p871_p0, %p870_p13 }
  0x23   : > { %p866_p6 = pneg %p865_p2 }
  0x25   : > { %p873_p8 = pnand %p872_p4, %p866_p6 }
  0x27   : > { %876 = shalt.err (!%p873_p8)
}
  0x28   : > { %754 = dma.hbm_to_vmem [thread:$0]  (!%p1060_p11), %s1283_s2, 64, %s144_s24, [#allocation7]  }
  0x29   : > { %p25_p1 = scmp.eq.s32.totalorder %s24_s27, 0  ;;  %s27_s7 = sadd.s32 1, %s969_s14 }
  0x2a   : > { %p34_p2 = scmp.ne.s32.totalorder %s969_s14, %s965_s13  ;;  %p35_p4 = scmp.eq.s32.totalorder %s973_s15, 0 }
  0x2b   : > { %s1092_s8 = scalar_select %p25_p1, %s969_s14, %s27_s7  }
  0x2c   : > { %p36_p6 = por %p35_p4, %p34_p2  ;;  %p1293_p8 = scmp.eq.s32.totalorder %s1032_s16, 1 }
  0x2d   : > { %p765_p12 = scmp.lt.s32.totalorder %s973_s15, 2  ;;  %s154_s10 = sand.u32 1, %s969_s14  }
  0x2e   : > { %p1096_p9 = por %p1293_p8, %p34_p2  ;;  %s689_s11 = sshll.u32 %s154_s10, 2 }
  0x2f   : > { %s690_s17 = sshll.u32 %s973_s15, 6  ;;  %s158_s24 = scalar_lea.vmem [#allocation3], %s689_s11 }
  0x30   : > { %s1294_s9 = scalar_select %p1096_p9, 1, 0 }
  0x31   : > { %s1106_s23 = scalar_lea.hbm %s1281_s0, %s690_s17  ;;  %s165_s25 = sshll.u32 %s158_s24, 4  ;;  %s166_s25 = int_to_ptr.vmem [resolvable:$true] %s165_s25 }
  0x32   : > { %p1108_p11 = pnand %p765_p12, %p36_p6  ;;  %s155_s28 = scalar_lea.sflag [#allocation4], %s154_s10 }
  0x33   : > { %s877_s29 = scalar_lea.hbm %s1106_s23, 64  ;;  %s882_s5 = scalar_lea.hbm %s1281_s0, 128 }
  0x34   : > { %p878_p3 = scmp.ne.s32.totalorder %s1106_s23, %s877_s29  ;;  %p879_p5 = pneg %p1108_p11 }
  0x35   : > { %p883_p13 = scmp.lt.s32.totalorder %s1106_s23, %s1281_s0  ;;  %p884_p0 = scmp.lt.s32.totalorder %s882_s5, %s877_s29 }
  0x36   : > { %p880_p7 = pnand %p879_p5, %p878_p3 }
  0x37   : > { %p885_p1 = por %p884_p0, %p883_p13 }
  0x38   : > { %p881_p10 = pneg %p880_p7 }
  0x3a   : > { %p886_p2 = pnand %p885_p1, %p881_p10 }
  0x3c   : > { %889 = shalt.err (!%p886_p2)
}
  0x3d   : > { %s890_s11 = scalar_lea.vmem %s166_s25, 64  ;;  %s977_s10 = smov [#allocation3]  }
  0x3e   : > { %p891_p4 = scmp.ne.s32.totalorder %s166_s25, %s890_s11  ;;  %s895_s17 = sshll.u32 %s977_s10, 4  ;;  %s896_s17 = int_to_ptr.vmem [resolvable:$false] %s895_s17 }
  0x3f   : > { %s897_s21 = scalar_lea.vmem %s896_s17, 128  ;;  %p898_p12 = scmp.lt.s32.totalorder %s166_s25, %s896_s17 }
  0x40   : > { %p893_p6 = pnand %p891_p4, %p879_p5  ;;  %p899_p3 = scmp.lt.s32.totalorder %s897_s21, %s890_s11 }
  0x42   : > { %p894_p8 = pneg %p893_p6  ;;  %p900_p7 = por %p899_p3, %p898_p12 }
  0x44   : > { %p901_p9 = pnand %p900_p7, %p894_p8 }
  0x46   : > { %904 = shalt.err (!%p901_p9)
}
  0x47   : > { %758 = dma.hbm_to_vmem [thread:$0]  (!%p1108_p11), %s1106_s23, 64, %s166_s25, %s155_s28  }
  0x48   : > { %p1296_p10 = scmp.ne.s32.totalorder %s1291_s20, 0 }
  0x49   : > { %s1129_s22 = sand.u32 (!%p1296_p10), 1, %s965_s13   ;;  %p1297_p5 = scmp.ne.s32.totalorder (!%p1296_p10), %s1289_s18, 0 }
  0x4a   : > { %174 = sbr.rel (%p1296_p10) target bundleno = 1573 (0x625), region = 32  ;;  %s692_s24 = sshll.u32 (!%p1296_p10), %s1129_s22, 2 }
  0x4b   : > { %s177_s29 = scalar_lea.sflag (!%p1296_p10), [#allocation4], %s1129_s22  ;;  %s180_s30 = scalar_lea.vmem (!%p1296_p10), [#allocation3], %s692_s24 }
  0x4f   : > { %948 = dma.done.wait (%p1297_p5), %s177_s29, 64  }
  0x50   : > { %950 = vsyncadd (%p1297_p5), %s177_s29, 4294967232  ;;  %p1298_p9 = scmp.eq.s32.totalorder %s1032_s16, 0 }
  0x52   : > { %952 = dma.done.wait (%p1298_p9), [#allocation7], 128   ;;  %p1299_p11 = pmov %p1298_p9 }
  0x53   : > { %vm212_vm0 = vcmask 125952   ;;  %v1143_v0 = vld [vmem:[%s180_s30] sm:$0xf]  ;;  %s978_s20 = smov 124   ;;  %s979_s23 = smov 122   ;;  %vm218_vm1 = vcmask 1028072  }
  0x54   : > { %954 = vsyncadd (%p1299_p11), [#allocation7], 4294967168  ;;  %220 = vrot.lane.b32.xlu1 %v1143_v0, %s978_s20  ;;  %215 = vrot.lane.b32.xlu0 %v1143_v0, %s979_s23  ;;  %213 = vst.msk [vmem:[#allocation2 + $0x4] sm:$0xf] %vm212_vm0, %v1143_v0  ;;  %s980_s18 = smov 4   ;;  %s981_s25 = smov 2  }
  0x55   : > { %s982_s27 = smov 6   ;;  %s983_s28 = smov 126   ;;  %vm223_vm2 = vcmask 1036272   ;;  %vm233_vm3 = vcmask 134272   ;;  %vm238_vm4 = vcmask 142472   ;;  %vm243_vm5 = vcmask 150672  }
  0x56   : > { %vm228_vm6 = vcmask 1044472   ;;  %v984_v10 = vmov 0.0   ;;  %s985_s4 = smov 125   ;;  %s986_s5 = smov 123   ;;  %vm263_vm7 = vcmask 1031168   ;;  %vm280_vm8 = vcmask 1043456  }
  0x57   : > { %714 = vmatprep.subr.mxu0 %v984_v10  ;;  %725 = vmatprep.subr.mxu1 %v984_v10  ;;  %s987_s6 = smov 127   ;;  %s988_s7 = smov 3   ;;  %vm989_vm9 = vmmov 0   ;;  %vm255_vm10 = vcmask 1039360   ;;  %vm304_vm11 = vcmask 23552   ;;  %vm310_vm12 = vcmask 228352  }
  0x58   : > { %235 = vrot.lane.b32.xlu1 %v1143_v0, %s980_s18  ;;  %230 = vrot.lane.b32.xlu0 %v1143_v0, %s981_s25  ;;  %v286_v35 = vld [vmem:[#allocation6] sm:$0xf]  ;;  %s701_s11 = sshll.u32 %s1032_s16, 6  ;;  %s210_s10 = scalar_lea.vmem [#allocation9], %s692_s24 }
  0x59   : > { %722 = vmatprep.mubr.msk.f32.mxu0 %vm989_vm9, %v984_v10  ;;  %733 = vmatprep.mubr.msk.f32.mxu1 %vm989_vm9, %v984_v10  ;;  %s595_s17 = sshll.u32 %s210_s10, 4  ;;  %s593_s30 = scalar_lea.hbm %s1284_s3, %s701_s11  ;;  %s596_s17 = int_to_ptr.vmem [resolvable:$true] %s595_s17 }
  0x5a   : > { %p1300_p0 = scmp.ne.s32.totalorder %s1294_s9, 0  ;;  %s990_s16 = smov [#allocation9]  }
  0x5c   : > { %240 = vrot.lane.b32.xlu1 %v1143_v0, %s982_s27  ;;  %225 = vrot.lane.b32.xlu0 %v1143_v0, %s983_s28 }
  0xc6   : > { %v221_v1 = vpop.permute.xlu1 %220  ;;  %v216_v2 = vpop.permute.xlu0 %215 }
  0xc7   : > { %219 = vst.msk [vmem:[#allocation2] sm:$0xf] %vm218_vm1, %v216_v2 }
  0xc8   : > { %224 = vst.msk [vmem:[#allocation2] sm:$0xf] %vm223_vm2, %v221_v1 }
  0xca   : > { %v236_v3 = vpop.permute.xlu1 %235  ;;  %v231_v4 = vpop.permute.xlu0 %230 }
  0xcb   : > { %234 = vst.msk [vmem:[#allocation2 + $0x4] sm:$0xf] %vm233_vm3, %v231_v4 }
  0xcc   : > { %239 = vst.msk [vmem:[#allocation2 + $0x4] sm:$0xf] %vm238_vm4, %v236_v3 }
  0xce   : > { %v241_v5 = vpop.permute.xlu1 %240  ;;  %v226_v6 = vpop.permute.xlu0 %225 }
  0xcf   : > { %244 = vst.msk [vmem:[#allocation2 + $0x4] sm:$0xf] %vm243_vm5, %v241_v5 }
  0xd0   : > { %229 = vst.msk [vmem:[#allocation2] sm:$0xf] %vm228_vm6, %v226_v6 }
  0xd6   : > { %v246_v7 = vld [vmem:[#allocation2 + $0x4] sm:$0xf] }
  0xd7   : > { %v245_v8 = vld [vmem:[#allocation2] sm:$0xff]  ;;  %278 = vrot.lane.b32.xlu0 %v246_v7, %s979_s23  ;;  %v268_v11 = vcombine.low %v246_v7, %v246_v7 }
  0xd8   : > { %259 = vrot.lane.b32.xlu1 %v245_v8, %s983_s28  ;;  %v248_v9 = vcombine.high %v245_v8, %v245_v8  ;;  %v250_v12 = vcombine.low %v245_v8, %v245_v8 }
  0xdb   : > { %261 = vrot.lane.b32.xlu0 %v248_v9, %s983_s28 }
  0xdc   : > { %272 = vrot.lane.b32.xlu1 %v246_v7, %s978_s20 }
  0xdf   : > { %275 = vrot.lane.b32.xlu0 %v268_v11, %s986_s5 }
  0xe0   : > { %269 = vrot.lane.b32.xlu1 %v268_v11, %s985_s4 }
  0xe3   : > { %251 = vrot.lane.b32.xlu0 %v250_v12, %s987_s6 }
  0xe4   : > { %253 = vrot.lane.b32.xlu1 %v245_v8, %s987_s6 }
 0x149   : > { %v279_v13 = vpop.permute.xlu0 %278 }
 0x14a   : > { %v260_v14 = vpop.permute.xlu1 %259  ;;  %302 = vrot.lane.b32.xlu0 %v279_v13, %s988_s7 }
 0x14d   : > { %v262_v16 = vpop.permute.xlu0 %261 }
 0x14e   : > { %v273_v15 = vpop.permute.xlu1 %272  ;;  %v264_v17 = vsel %vm263_vm7, %v260_v14, %v262_v16 }
 0x151   : > { %v276_v19 = vpop.permute.xlu0 %275 }
 0x152   : > { %v270_v18 = vpop.permute.xlu1 %269  ;;  %v285_v21 = vsel %vm280_vm8, %v273_v15, %v276_v19 }
 0x153   : > { %v283_v20 = vsel %vm280_vm8, %v264_v17, %v270_v18  ;;  %300 = vrot.lane.b32.xlu1 %v285_v21, %s988_s7  ;;  %v284_v25 = vsel %vm280_vm8, %v262_v16, %v270_v18 }
 0x154   : > { %296 = vrot.lane.b32.xlu0 %v283_v20, %s988_s7 }
 0x155   : > { %v252_v23 = vpop.permute.xlu0 %251 }
 0x156   : > { %v254_v22 = vpop.permute.xlu1 %253 }
 0x157   : > { %v256_v24 = vsel %vm255_vm10, %v252_v23, %v254_v22  ;;  %298 = vrot.lane.b32.xlu1 %v284_v25, %s988_s7  ;;  %v282_v27 = vsel %vm280_vm8, %v248_v9, %v254_v22 }
 0x158   : > { %v281_v26 = vsel %vm280_vm8, %v245_v8, %v256_v24  ;;  %v466_v24 = vld [vmem:[#allocation8] sm:$0xf] }
 0x159   : > { %292 = vrot.lane.b32.xlu0 %v281_v26, %s988_s7 }
 0x15b   : > { %294 = vrot.lane.b32.xlu1 %v282_v27, %s988_s7 }
 0x1bc   : > { %v303_v28 = vpop.permute.xlu0 %302 }
 0x1bd   : > { %715 = vmatpush3.msk.msra.mxu0 %vm280_vm8, %v303_v28 }
 0x1be   : > { %716 = vmatprep.subr.mxu0 %v984_v10 }
 0x1c5   : > { %v301_v29 = vpop.permute.xlu1 %300 }
 0x1c6   : > { %717 = vmatpush3.msra.mxu0 %v301_v29  ;;  %v297_v30 = vpop.permute.xlu0 %296 }
 0x1c7   : > { %718 = vmatprep.subr.mxu0 %v984_v10 }
 0x1c9   : > { %v299_v31 = vpop.permute.xlu1 %298 }
 0x1ca   : > { %v306_v32 = vsel %vm304_vm11, %v297_v30, %v299_v31 }
 0x1cb   : > { %719 = vmatpush3.msra.mxu0 %v306_v32  ;;  %v293_v33 = vpop.permute.xlu0 %292 }
 0x1cc   : > { %720 = vmatprep.subr.mxu0 %v984_v10 }
 0x1cd   : > { %v295_v34 = vpop.permute.xlu1 %294 }
 0x1ce   : > { %v305_v36 = vsel %vm304_vm11, %v293_v33, %v295_v34 }
 0x1cf   : > { %721 = vmatpush3.msra.mxu0 %v305_v36 }
 0x1d0   : > { %723 = vmatmul.mubr.msk.f32.vlgmr.msra.gmra.mxu0 %vm310_vm12, %v286_v35 }
 0x290   : > { %v382_v37 = vpop.f32.mrf.mxu0 }
 0x291   : > { %v386_v38 = vsel %vm212_vm0, %v382_v37, 0.0  ;;  %v389_v39 = vmul.f32 %v382_v37, %v382_v37 }
 0x292   : > { %387 = vadd.xlane.f32.xlu0 %v386_v38  ;;  %v724_v40 = vpop.f32.mrf.mxu0 }
 0x293   : > { %v390_v41 = vsel %vm212_vm0, %v389_v39, 0.0 }
 0x294   : > { %391 = vadd.xlane.f32.xlu1 %v390_v41 }
 0x31b   : > { %v388_v42 = vpop.xlane.xlu0 %387 }
 0x31c   : > { %v393_v43 = vmul.f32 0.0625, %v388_v42 }
 0x31d   : > { %v392_v44 = vpop.xlane.xlu1 %391 }
 0x31e   : > { %v395_v45 = vmul.f32 %v393_v43, %v393_v43  ;;  %v394_v46 = vmul.f32 0.0625, %v392_v44  ;;  %v397_v49 = vsub.f32 %v382_v37, %v393_v43 }
 0x320   : > { %v396_v47 = vsub.f32 %v394_v46, %v395_v45 }
 0x322   : > { %v398_v48 = vadd.f32 1e-05, %v396_v47 }
 0x324   : > { %821 = vrsqrt.f32 %v398_v48 }
 0x331   : > { %v822_v50 = vpop.eup %821 }
 0x332   : > { %v400_v51 = vmul.f32 %v822_v50, %v397_v49 }
 0x334   : > { %v401_v52 = vmax.f32 %v400_v51, 0.0 }
 0x336   : > { %402 = vst.msk [vmem:[#allocation2 + $0x4] sm:$0xf] %vm212_vm0, %v401_v52  ;;  %416 = vrot.lane.b32.xlu1 %v401_v52, %s981_s25  ;;  %404 = vrot.lane.b32.xlu0 %v401_v52, %s979_s23 }
 0x33a   : > { %420 = vrot.lane.b32.xlu1 %v401_v52, %s980_s18  ;;  %408 = vrot.lane.b32.xlu0 %v401_v52, %s978_s20  ;;  %s909_s18 = sshll.u32 %s990_s16, 4  ;;  %s910_s18 = int_to_ptr.vmem [resolvable:$false] %s909_s18 }
 0x33b   : > { %s911_s24 = scalar_lea.vmem %s910_s18, 128  ;;  %p912_p4 = scmp.lt.s32.totalorder %s596_s17, %s910_s18 }
 0x33e   : > { %424 = vrot.lane.b32.xlu1 %v401_v52, %s982_s27  ;;  %412 = vrot.lane.b32.xlu0 %v401_v52, %s983_s28 }
 0x3a8   : > { %v417_v53 = vpop.permute.xlu1 %416  ;;  %v405_v54 = vpop.permute.xlu0 %404 }
 0x3a9   : > { %419 = vst.msk [vmem:[#allocation2 + $0x4] sm:$0xf] %vm233_vm3, %v417_v53 }
 0x3aa   : > { %407 = vst.msk [vmem:[#allocation2] sm:$0xf] %vm218_vm1, %v405_v54 }
 0x3ac   : > { %v421_v55 = vpop.permute.xlu1 %420  ;;  %v409_v56 = vpop.permute.xlu0 %408 }
 0x3ad   : > { %423 = vst.msk [vmem:[#allocation2 + $0x4] sm:$0xf] %vm238_vm4, %v421_v55 }
 0x3ae   : > { %411 = vst.msk [vmem:[#allocation2] sm:$0xf] %vm223_vm2, %v409_v56 }
 0x3b0   : > { %v425_v57 = vpop.permute.xlu1 %424  ;;  %v413_v58 = vpop.permute.xlu0 %412 }
 0x3b1   : > { %427 = vst.msk [vmem:[#allocation2 + $0x4] sm:$0xf] %vm243_vm5, %v425_v57 }
 0x3b2   : > { %415 = vst.msk [vmem:[#allocation2] sm:$0xf] %vm228_vm6, %v413_v58 }
 0x3b8   : > { %v429_v59 = vld [vmem:[#allocation2 + $0x4] sm:$0xf] }
 0x3b9   : > { %v428_v60 = vld [vmem:[#allocation2] sm:$0xff]  ;;  %459 = vrot.lane.b32.xlu0 %v429_v59, %s979_s23  ;;  %v449_v62 = vcombine.low %v429_v59, %v429_v59  ;;  %s905_s23 = scalar_lea.vmem %s596_s17, 64 }
 0x3ba   : > { %441 = vrot.lane.b32.xlu1 %v428_v60, %s983_s28  ;;  %v431_v61 = vcombine.high %v428_v60, %v428_v60  ;;  %v433_v63 = vcombine.low %v428_v60, %v428_v60  ;;  %p906_p13 = scmp.ne.s32.totalorder %s596_s17, %s905_s23  ;;  %p913_p6 = scmp.lt.s32.totalorder %s911_s24, %s905_s23 }
 0x3bc   : > { %p907_p1 = pnand %p906_p13, %p1300_p0  ;;  %p914_p8 = por %p913_p6, %p912_p4 }
 0x3bd   : > { %443 = vrot.lane.b32.xlu0 %v431_v61, %s983_s28 }
 0x3be   : > { %453 = vrot.lane.b32.xlu1 %v429_v59, %s978_s20  ;;  %s582_s20 = scalar_lea.sflag [#allocation5], %s1129_s22  ;;  %p908_p2 = pneg %p907_p1 }
 0x3c0   : > { %p915_p12 = pnand %p914_p8, %p908_p2 }
 0x3c1   : > { %456 = vrot.lane.b32.xlu0 %v449_v62, %s986_s5 }
 0x3c2   : > { %450 = vrot.lane.b32.xlu1 %v449_v62, %s985_s4 }
 0x3c5   : > { %434 = vrot.lane.b32.xlu0 %v433_v63, %s987_s6 }
 0x3c6   : > { %436 = vrot.lane.b32.xlu1 %v428_v60, %s987_s6 }
 0x42b   : > { %v460_v1 = vpop.permute.xlu0 %459 }
 0x42c   : > { %v442_v2 = vpop.permute.xlu1 %441  ;;  %482 = vrot.lane.b32.xlu0 %v460_v1, %s988_s7 }
 0x42f   : > { %v444_v4 = vpop.permute.xlu0 %443 }
 0x430   : > { %v454_v3 = vpop.permute.xlu1 %453  ;;  %v445_v5 = vsel %vm263_vm7, %v442_v2, %v444_v4 }
 0x433   : > { %v457_v7 = vpop.permute.xlu0 %456 }
 0x434   : > { %v451_v6 = vpop.permute.xlu1 %450  ;;  %v465_v9 = vsel %vm280_vm8, %v454_v3, %v457_v7 }
 0x435   : > { %v463_v8 = vsel %vm280_vm8, %v445_v5, %v451_v6  ;;  %480 = vrot.lane.b32.xlu1 %v465_v9, %s988_s7  ;;  %v464_v14 = vsel %vm280_vm8, %v444_v4, %v451_v6 }
 0x436   : > { %476 = vrot.lane.b32.xlu0 %v463_v8, %s988_s7 }
 0x437   : > { %v435_v12 = vpop.permute.xlu0 %434 }
 0x438   : > { %v437_v11 = vpop.permute.xlu1 %436 }
 0x439   : > { %v438_v13 = vsel %vm255_vm10, %v435_v12, %v437_v11  ;;  %478 = vrot.lane.b32.xlu1 %v464_v14, %s988_s7  ;;  %v462_v16 = vsel %vm280_vm8, %v431_v61, %v437_v11 }
 0x43a   : > { %v461_v15 = vsel %vm280_vm8, %v428_v60, %v438_v13 }
 0x43b   : > { %472 = vrot.lane.b32.xlu0 %v461_v15, %s988_s7 }
 0x43d   : > { %474 = vrot.lane.b32.xlu1 %v462_v16, %s988_s7 }
 0x49e   : > { %v483_v17 = vpop.permute.xlu0 %482 }
 0x49f   : > { %726 = vmatpush3.msk.msra.mxu1 %vm280_vm8, %v483_v17 }
 0x4a0   : > { %727 = vmatprep.subr.mxu1 %v984_v10 }
 0x4a7   : > { %v481_v18 = vpop.permute.xlu1 %480 }
 0x4a8   : > { %728 = vmatpush3.msra.mxu1 %v481_v18  ;;  %v477_v19 = vpop.permute.xlu0 %476 }
 0x4a9   : > { %729 = vmatprep.subr.mxu1 %v984_v10 }
 0x4ab   : > { %v479_v20 = vpop.permute.xlu1 %478 }
 0x4ac   : > { %v485_v21 = vsel %vm304_vm11, %v477_v19, %v479_v20 }
 0x4ad   : > { %730 = vmatpush3.msra.mxu1 %v485_v21  ;;  %v473_v22 = vpop.permute.xlu0 %472 }
 0x4ae   : > { %731 = vmatprep.subr.mxu1 %v984_v10 }
 0x4af   : > { %v475_v23 = vpop.permute.xlu1 %474 }
 0x4b0   : > { %v484_v25 = vsel %vm304_vm11, %v473_v22, %v475_v23 }
 0x4b1   : > { %732 = vmatpush3.msra.mxu1 %v484_v25 }
 0x4b2   : > { %734 = vmatmul.mubr.msk.f32.vlgmr.msra.gmra.mxu1 %vm310_vm12, %v466_v24 }
 0x572   : > { %v560_v26 = vpop.f32.mrf.mxu1 }
 0x573   : > { %v564_v27 = vsel %vm212_vm0, %v560_v26, 0.0  ;;  %v567_v28 = vmul.f32 %v560_v26, %v560_v26 }
 0x574   : > { %565 = vadd.xlane.f32.xlu0 %v564_v27  ;;  %v735_v29 = vpop.f32.mrf.mxu1 }
 0x575   : > { %v568_v30 = vsel %vm212_vm0, %v567_v28, 0.0 }
 0x576   : > { %569 = vadd.xlane.f32.xlu1 %v568_v30 }
 0x5fd   : > { %v566_v10 = vpop.xlane.xlu0 %565 }
 0x5fe   : > { %v571_v31 = vmul.f32 0.0625, %v566_v10 }
 0x5ff   : > { %v570_v32 = vpop.xlane.xlu1 %569 }
 0x600   : > { %v573_v33 = vmul.f32 %v571_v31, %v571_v31  ;;  %v572_v34 = vmul.f32 0.0625, %v570_v32  ;;  %v575_v37 = vsub.f32 %v560_v26, %v571_v31 }
 0x602   : > { %v574_v35 = vsub.f32 %v572_v34, %v573_v33 }
 0x604   : > { %v576_v36 = vadd.f32 1e-05, %v574_v35 }
 0x606   : > { %823 = vrsqrt.f32 %v576_v36 }
 0x613   : > { %v824_v38 = vpop.eup %823 }
 0x614   : > { %v578_v39 = vmul.f32 %v824_v38, %v575_v37 }
 0x616   : > { %v579_v40 = vadd.f32 %v578_v39, %v1143_v0 }
 0x618   : > { %580 = vst.msk [vmem:[%s210_s10] sm:$0xf] %vm212_vm0, %v579_v40 }
 0x619   : > { %918 = shalt.err (!%p915_p12)
}
 0x61a   : > { %s919_s25 = scalar_lea.hbm %s593_s30, 64  ;;  %s923_s28 = scalar_lea.hbm %s1284_s3, 128 }
 0x61b   : > { %p920_p3 = scmp.ne.s32.totalorder %s593_s30, %s919_s25  ;;  %p924_p5 = scmp.lt.s32.totalorder %s593_s30, %s1284_s3 }
 0x61c   : > { %p925_p9 = scmp.lt.s32.totalorder %s923_s28, %s919_s25 }
 0x61d   : > { %p921_p7 = pnand %p920_p3, %p1300_p0 }
 0x61e   : > { %p926_p11 = por %p925_p9, %p924_p5 }
 0x61f   : > { %p922_p10 = pneg %p921_p7 }
 0x621   : > { %p927_p13 = pnand %p926_p11, %p922_p10 }
 0x623   : > { %930 = shalt.err (!%p927_p13)
}
 0x624   : > { %746 = dma.vmem_to_hbm [thread:$0]  (%p1300_p0), %s596_s17, 64, %s593_s30, %s582_s20  }
 0x625 PF: > { %s607_s6 = sand.u32 1, %s961_s12   ;;  %p1301_p1 = scmp.ne.s32.totalorder %s1290_s19, 0 }
 0x626   : > { %p1302_p2 = scmp.ge.s32.totalorder %s973_s15, 2  ;;  %s608_s7 = scalar_lea.sflag [#allocation5], %s607_s6 }
 0x628   : > { %p760_p4 = pnand %p1302_p2, %p1301_p1 }
 0x62a   : > { %p761_p6 = pneg %p760_p4 }
 0x62c   : > { %956 = dma.done.wait (%p761_p6), %s608_s7, 64  }
 0x62d   : > { %958 = vsyncadd (%p761_p6), %s608_s7, 4294967232  ;;  %p17_p8 = scmp.ge.s32.totalorder %s1065_s26, 4   ;;  %s1303_s12 = smov %s965_s13 }
 0x62e   : > { %s1304_s13 = smov %s969_s14  ;;  %s1305_s14 = smov %s1092_s8 }
 0x62f   : > { %s1306_s15 = smov %s1065_s26  ;;  %19 = sbr.rel (!%p17_p8) target bundleno = 6 (0x6), region = 85 }
 0x634   :  { %613 = vsyncpa [#allocation4], 1 }
 0x635   :  { %615 = vsyncpa [#allocation4 + $0x1], 1 }
 0x636   :  { %616 = vsyncpa [#allocation7], 1 }
 0x637   :  { %617 = vsyncpa [#allocation5], 1 }
 0x638   :  { %619 = vsyncpa [#allocation5 + $0x1], 1 }

// kernel: tpu_custom_call.1
= control target key start
LH: loop header
LB: loop body
LE: loop exit
PB: predicated region body
PF: predicated region fallthrough
CT: control target
= control target key end

     0   :  { %8 = vsyncpa [#allocation4], 0  ;;  %s1281_s0 = inlined_call_operand.hbm [shape: f32[2,4,16], index: 0, kind: input, shape index: {}]   ;;  %s1282_s1 = inlined_call_operand.hbm [shape: f32[4,28], index: 1, kind: input, shape index: {}]   ;;  %s1283_s2 = inlined_call_operand.hbm [shape: f32[4,28], index: 2, kind: input, shape index: {}]   ;;  %s1284_s3 = inlined_call_operand.hbm [shape: f32[2,4,16], index: 3, kind: output, shape index: {}]  }
   0x1   :  { %10 = vsyncpa [#allocation4 + $0x1], 0 }
   0x2   :  { %11 = vsyncpa [#allocation7], 0 }
   0x3   :  { %12 = vsyncpa [#allocation5], 0 }
   0x4   :  { %14 = vsyncpa [#allocation5 + $0x1], 0  ;;  %s1011_s12 = smov 0   ;;  %s1013_s13 = smov 0  }
   0x5   :  { %s1015_s14 = smov 0   ;;  %s1017_s15 = smov 0  }
   0x6 LB: > { %s1032_s16 = sadd.s32 4294967295, %s973_s15   ;;  %s684_s17 = sadd.s32 4294967294, %s973_s15   ;;  %s973_s15 = sphi %s1017_s15, %s1306_s15   ;;  %s969_s14 = sphi %s1015_s14, %s1305_s14   ;;  %s965_s13 = sphi %s1013_s13, %s1304_s13   ;;  %s961_s12 = sphi %s1011_s12, %s1303_s12  }
   0x7   : > { %p40_p0 = scmp.ne.s32.totalorder %s965_s13, %s961_s12  ;;  %p1285_p1 = scmp.eq.s32.totalorder %s1032_s16, 0 }
   0x8   : > { %p112_p3 = scmp.eq.s32.totalorder %s684_s17, 1  ;;  %p685_p5 = scmp.ge.s32.totalorder %s973_s15, 1 }
   0x9   : > { %p1041_p4 = por %p1285_p1, %p40_p0  ;;  %p119_p7 = scmp.lt.s32.totalorder %s973_s15, 3 }
   0xa   : > { %p1046_p6 = por %p112_p3, %p40_p0  ;;  %s975_s21 = smov [#allocation6]  }
   0xb   : > { %s1289_s18 = scalar_select %p1041_p4, 1, 0 }
   0xc   : > { %s1290_s19 = scalar_select %p1046_p6, 1, 0 }
   0xd   : > { %p1051_p8 = pnand %p685_p5, %p119_p7  ;;  %s132_s22 = sshll.u32 %s975_s21, 4  ;;  %s133_s22 = int_to_ptr.vmem [resolvable:$true] %s132_s22 }
   0xe   : > { %s976_s23 = smov [#allocation8]   ;;  %s1065_s26 = sadd.s32 1, %s973_s15  }
   0xf   : > { %s1291_s20 = scalar_select %p1051_p8, 1, 0 }
  0x10   : > { %p748_p10 = pneg %p1051_p8  ;;  %s143_s24 = sshll.u32 %s976_s23, 4  ;;  %s144_s24 = int_to_ptr.vmem [resolvable:$true] %s143_s24 }
  0x11   : > { %s24_s27 = ssub.s32 %s973_s15, %s1065_s26  ;;  %s836_s28 = scalar_lea.vmem %s133_s22, 64 }
  0x12   : > { %p1060_p11 = pnand %p748_p10, %p1285_p1  ;;  %p837_p13 = scmp.ne.s32.totalorder %s133_s22, %s836_s28 }
  0x13   : > { %p844_p5 = scmp.lt.s32.totalorder %s133_s22, %s133_s22  ;;  %p845_p7 = scmp.lt.s32.totalorder %s836_s28, %s836_s28 }
  0x14   : > { %p827_p12 = pneg %p1060_p11 }
  0x15   : > { %p846_p10 = por %p845_p7, %p844_p5 }
  0x16   : > { %p839_p0 = pnand %p837_p13, %p827_p12 }
  0x18   : > { %p840_p3 = pneg %p839_p0 }
  0x1a   : > { %p847_p9 = pnand %p846_p10, %p840_p3 }
  0x1c   : > { %850 = shalt.err (!%p847_p9)
}
  0x1d   : > { %751 = dma.hbm_to_vmem [thread:$0]  (!%p1060_p11), %s1282_s1, 64, %s133_s22, [#allocation7]  }
  0x1e   : > { %s862_s4 = scalar_lea.vmem %s144_s24, 64  ;;  %p870_p13 = scmp.lt.s32.totalorder %s144_s24, %s144_s24 }
  0x1f   : > { %p863_p1 = scmp.ne.s32.totalorder %s144_s24, %s862_s4  ;;  %p871_p0 = scmp.lt.s32.totalorder %s862_s4, %s862_s4 }
  0x21   : > { %p865_p2 = pnand %p863_p1, %p827_p12  ;;  %p872_p4 = por %p871_p0, %p870_p13 }
  0x23   : > { %p866_p6 = pneg %p865_p2 }
  0x25   : > { %p873_p8 = pnand %p872_p4, %p866_p6 }
  0x27   : > { %876 = shalt.err (!%p873_p8)
}
  0x28   : > { %754 = dma.hbm_to_vmem [thread:$0]  (!%p1060_p11), %s1283_s2, 64, %s144_s24, [#allocation7]  }
  0x29   : > { %p25_p1 = scmp.eq.s32.totalorder %s24_s27, 0  ;;  %s27_s7 = sadd.s32 1, %s969_s14 }
  0x2a   : > { %p34_p2 = scmp.ne.s32.totalorder %s969_s14, %s965_s13  ;;  %p35_p4 = scmp.eq.s32.totalorder %s973_s15, 0 }
  0x2b   : > { %s1092_s8 = scalar_select %p25_p1, %s969_s14, %s27_s7  }
  0x2c   : > { %p36_p6 = por %p35_p4, %p34_p2  ;;  %p1293_p8 = scmp.eq.s32.totalorder %s1032_s16, 1 }
  0x2d   : > { %p765_p12 = scmp.lt.s32.totalorder %s973_s15, 2  ;;  %s154_s10 = sand.u32 1, %s969_s14  }
  0x2e   : > { %p1096_p9 = por %p1293_p8, %p34_p2  ;;  %s689_s11 = sshll.u32 %s154_s10, 2 }
  0x2f   : > { %s690_s17 = sshll.u32 %s973_s15, 6  ;;  %s158_s24 = scalar_lea.vmem [#allocation3], %s689_s11 }
  0x30   : > { %s1294_s9 = scalar_select %p1096_p9, 1, 0 }
  0x31   : > { %s1106_s23 = scalar_lea.hbm %s1281_s0, %s690_s17  ;;  %s165_s25 = sshll.u32 %s158_s24, 4  ;;  %s166_s25 = int_to_ptr.vmem [resolvable:$true] %s165_s25 }
  0x32   : > { %p1108_p11 = pnand %p765_p12, %p36_p6  ;;  %s155_s28 = scalar_lea.sflag [#allocation4], %s154_s10 }
  0x33   : > { %s877_s29 = scalar_lea.hbm %s1106_s23, 64  ;;  %s882_s5 = scalar_lea.hbm %s1281_s0, 128 }
  0x34   : > { %p878_p3 = scmp.ne.s32.totalorder %s1106_s23, %s877_s29  ;;  %p879_p5 = pneg %p1108_p11 }
  0x35   : > { %p883_p13 = scmp.lt.s32.totalorder %s1106_s23, %s1281_s0  ;;  %p884_p0 = scmp.lt.s32.totalorder %s882_s5, %s877_s29 }
  0x36   : > { %p880_p7 = pnand %p879_p5, %p878_p3 }
  0x37   : > { %p885_p1 = por %p884_p0, %p883_p13 }
  0x38   : > { %p881_p10 = pneg %p880_p7 }
  0x3a   : > { %p886_p2 = pnand %p885_p1, %p881_p10 }
  0x3c   : > { %889 = shalt.err (!%p886_p2)
}
  0x3d   : > { %s890_s11 = scalar_lea.vmem %s166_s25, 64  ;;  %s977_s10 = smov [#allocation3]  }
  0x3e   : > { %p891_p4 = scmp.ne.s32.totalorder %s166_s25, %s890_s11  ;;  %s895_s17 = sshll.u32 %s977_s10, 4  ;;  %s896_s17 = int_to_ptr.vmem [resolvable:$false] %s895_s17 }
  0x3f   : > { %s897_s21 = scalar_lea.vmem %s896_s17, 128  ;;  %p898_p12 = scmp.lt.s32.totalorder %s166_s25, %s896_s17 }
  0x40   : > { %p893_p6 = pnand %p891_p4, %p879_p5  ;;  %p899_p3 = scmp.lt.s32.totalorder %s897_s21, %s890_s11 }
  0x42   : > { %p894_p8 = pneg %p893_p6  ;;  %p900_p7 = por %p899_p3, %p898_p12 }
  0x44   : > { %p901_p9 = pnand %p900_p7, %p894_p8 }
  0x46   : > { %904 = shalt.err (!%p901_p9)
}
  0x47   : > { %758 = dma.hbm_to_vmem [thread:$0]  (!%p1108_p11), %s1106_s23, 64, %s166_s25, %s155_s28  }
  0x48   : > { %p1296_p10 = scmp.ne.s32.totalorder %s1291_s20, 0 }
  0x49   : > { %s1129_s22 = sand.u32 (!%p1296_p10), 1, %s965_s13   ;;  %p1297_p5 = scmp.ne.s32.totalorder (!%p1296_p10), %s1289_s18, 0 }
  0x4a   : > { %174 = sbr.rel (%p1296_p10) target bundleno = 1573 (0x625), region = 32  ;;  %s692_s24 = sshll.u32 (!%p1296_p10), %s1129_s22, 2 }
  0x4b   : > { %s177_s29 = scalar_lea.sflag (!%p1296_p10), [#allocation4], %s1129_s22  ;;  %s180_s30 = scalar_lea.vmem (!%p1296_p10), [#allocation3], %s692_s24 }
  0x4f   : > { %948 = dma.done.wait (%p1297_p5), %s177_s29, 64  }
  0x50   : > { %950 = vsyncadd (%p1297_p5), %s177_s29, 4294967232  ;;  %p1298_p9 = scmp.eq.s32.totalorder %s1032_s16, 0 }
  0x52   : > { %952 = dma.done.wait (%p1298_p9), [#allocation7], 128   ;;  %p1299_p11 = pmov %p1298_p9 }
  0x53   : > { %vm212_vm0 = vcmask 125952   ;;  %v1143_v0 = vld [vmem:[%s180_s30] sm:$0xf]  ;;  %s978_s20 = smov 124   ;;  %s979_s23 = smov 122   ;;  %vm218_vm1 = vcmask 1028072  }
  0x54   : > { %954 = vsyncadd (%p1299_p11), [#allocation7], 4294967168  ;;  %220 = vrot.lane.b32.xlu1 %v1143_v0, %s978_s20  ;;  %215 = vrot.lane.b32.xlu0 %v1143_v0, %s979_s23  ;;  %213 = vst.msk [vmem:[#allocation2 + $0x4] sm:$0xf] %vm212_vm0, %v1143_v0  ;;  %s980_s18 = smov 4   ;;  %s981_s25 = smov 2  }
  0x55   : > { %s982_s27 = smov 6   ;;  %s983_s28 = smov 126   ;;  %vm223_vm2 = vcmask 1036272   ;;  %vm233_vm3 = vcmask 134272   ;;  %vm238_vm4 = vcmask 142472   ;;  %vm243_vm5 = vcmask 150672  }
  0x56   : > { %vm228_vm6 = vcmask 1044472   ;;  %v984_v10 = vmov 0.0   ;;  %s985_s4 = smov 125   ;;  %s986_s5 = smov 123   ;;  %vm263_vm7 = vcmask 1031168   ;;  %vm280_vm8 = vcmask 1043456  }
  0x57   : > { %714 = vmatprep.subr.mxu0 %v984_v10  ;;  %725 = vmatprep.subr.mxu1 %v984_v10  ;;  %s987_s6 = smov 127   ;;  %s988_s7 = smov 3   ;;  %vm989_vm9 = vmmov 0   ;;  %vm255_vm10 = vcmask 1039360   ;;  %vm304_vm11 = vcmask 23552   ;;  %vm310_vm12 = vcmask 228352  }
  0x58   : > { %235 = vrot.lane.b32.xlu1 %v1143_v0, %s980_s18  ;;  %230 = vrot.lane.b32.xlu0 %v1143_v0, %s981_s25  ;;  %v286_v35 = vld [vmem:[#allocation6] sm:$0xf]  ;;  %s701_s11 = sshll.u32 %s1032_s16, 6  ;;  %s210_s10 = scalar_lea.vmem [#allocation9], %s692_s24 }
  0x59   : > { %722 = vmatprep.mubr.msk.f32.mxu0 %vm989_vm9, %v984_v10  ;;  %733 = vmatprep.mubr.msk.f32.mxu1 %vm989_vm9, %v984_v10  ;;  %s595_s17 = sshll.u32 %s210_s10, 4  ;;  %s593_s30 = scalar_lea.hbm %s1284_s3, %s701_s11  ;;  %s596_s17 = int_to_ptr.vmem [resolvable:$true] %s595_s17 }
  0x5a   : > { %p1300_p0 = scmp.ne.s32.totalorder %s1294_s9, 0  ;;  %s990_s16 = smov [#allocation9]  }
  0x5c   : > { %240 = vrot.lane.b32.xlu1 %v1143_v0, %s982_s27  ;;  %225 = vrot.lane.b32.xlu0 %v1143_v0, %s983_s28 }
  0xc6   : > { %v221_v1 = vpop.permute.xlu1 %220  ;;  %v216_v2 = vpop.permute.xlu0 %215 }
  0xc7   : > { %219 = vst.msk [vmem:[#allocation2] sm:$0xf] %vm218_vm1, %v216_v2 }
  0xc8   : > { %224 = vst.msk [vmem:[#allocation2] sm:$0xf] %vm223_vm2, %v221_v1 }
  0xca   : > { %v236_v3 = vpop.permute.xlu1 %235  ;;  %v231_v4 = vpop.permute.xlu0 %230 }
  0xcb   : > { %234 = vst.msk [vmem:[#allocation2 + $0x4] sm:$0xf] %vm233_vm3, %v231_v4 }
  0xcc   : > { %239 = vst.msk [vmem:[#allocation2 + $0x4] sm:$0xf] %vm238_vm4, %v236_v3 }
  0xce   : > { %v241_v5 = vpop.permute.xlu1 %240  ;;  %v226_v6 = vpop.permute.xlu0 %225 }
  0xcf   : > { %244 = vst.msk [vmem:[#allocation2 + $0x4] sm:$0xf] %vm243_vm5, %v241_v5 }
  0xd0   : > { %229 = vst.msk [vmem:[#allocation2] sm:$0xf] %vm228_vm6, %v226_v6 }
  0xd6   : > { %v246_v7 = vld [vmem:[#allocation2 + $0x4] sm:$0xf] }
  0xd7   : > { %v245_v8 = vld [vmem:[#allocation2] sm:$0xff]  ;;  %278 = vrot.lane.b32.xlu0 %v246_v7, %s979_s23  ;;  %v268_v11 = vcombine.low %v246_v7, %v246_v7 }
  0xd8   : > { %259 = vrot.lane.b32.xlu1 %v245_v8, %s983_s28  ;;  %v248_v9 = vcombine.high %v245_v8, %v245_v8  ;;  %v250_v12 = vcombine.low %v245_v8, %v245_v8 }
  0xdb   : > { %261 = vrot.lane.b32.xlu0 %v248_v9, %s983_s28 }
  0xdc   : > { %272 = vrot.lane.b32.xlu1 %v246_v7, %s978_s20 }
  0xdf   : > { %275 = vrot.lane.b32.xlu0 %v268_v11, %s986_s5 }
  0xe0   : > { %269 = vrot.lane.b32.xlu1 %v268_v11, %s985_s4 }
  0xe3   : > { %251 = vrot.lane.b32.xlu0 %v250_v12, %s987_s6 }
  0xe4   : > { %253 = vrot.lane.b32.xlu1 %v245_v8, %s987_s6 }
 0x149   : > { %v279_v13 = vpop.permute.xlu0 %278 }
 0x14a   : > { %v260_v14 = vpop.permute.xlu1 %259  ;;  %302 = vrot.lane.b32.xlu0 %v279_v13, %s988_s7 }
 0x14d   : > { %v262_v16 = vpop.permute.xlu0 %261 }
 0x14e   : > { %v273_v15 = vpop.permute.xlu1 %272  ;;  %v264_v17 = vsel %vm263_vm7, %v260_v14, %v262_v16 }
 0x151   : > { %v276_v19 = vpop.permute.xlu0 %275 }
 0x152   : > { %v270_v18 = vpop.permute.xlu1 %269  ;;  %v285_v21 = vsel %vm280_vm8, %v273_v15, %v276_v19 }
 0x153   : > { %v283_v20 = vsel %vm280_vm8, %v264_v17, %v270_v18  ;;  %300 = vrot.lane.b32.xlu1 %v285_v21, %s988_s7  ;;  %v284_v25 = vsel %vm280_vm8, %v262_v16, %v270_v18 }
 0x154   : > { %296 = vrot.lane.b32.xlu0 %v283_v20, %s988_s7 }
 0x155   : > { %v252_v23 = vpop.permute.xlu0 %251 }
 0x156   : > { %v254_v22 = vpop.permute.xlu1 %253 }
 0x157   : > { %v256_v24 = vsel %vm255_vm10, %v252_v23, %v254_v22  ;;  %298 = vrot.lane.b32.xlu1 %v284_v25, %s988_s7  ;;  %v282_v27 = vsel %vm280_vm8, %v248_v9, %v254_v22 }
 0x158   : > { %v281_v26 = vsel %vm280_vm8, %v245_v8, %v256_v24  ;;  %v466_v24 = vld [vmem:[#allocation8] sm:$0xf] }
 0x159   : > { %292 = vrot.lane.b32.xlu0 %v281_v26, %s988_s7 }
 0x15b   : > { %294 = vrot.lane.b32.xlu1 %v282_v27, %s988_s7 }
 0x1bc   : > { %v303_v28 = vpop.permute.xlu0 %302 }
 0x1bd   : > { %715 = vmatpush3.msk.msra.mxu0 %vm280_vm8, %v303_v28 }
 0x1be   : > { %716 = vmatprep.subr.mxu0 %v984_v10 }
 0x1c5   : > { %v301_v29 = vpop.permute.xlu1 %300 }
 0x1c6   : > { %717 = vmatpush3.msra.mxu0 %v301_v29  ;;  %v297_v30 = vpop.permute.xlu0 %296 }
 0x1c7   : > { %718 = vmatprep.subr.mxu0 %v984_v10 }
 0x1c9   : > { %v299_v31 = vpop.permute.xlu1 %298 }
 0x1ca   : > { %v306_v32 = vsel %vm304_vm11, %v297_v30, %v299_v31 }
 0x1cb   : > { %719 = vmatpush3.msra.mxu0 %v306_v32  ;;  %v293_v33 = vpop.permute.xlu0 %292 }
 0x1cc   : > { %720 = vmatprep.subr.mxu0 %v984_v10 }
 0x1cd   : > { %v295_v34 = vpop.permute.xlu1 %294 }
 0x1ce   : > { %v305_v36 = vsel %vm304_vm11, %v293_v33, %v295_v34 }
 0x1cf   : > { %721 = vmatpush3.msra.mxu0 %v305_v36 }
 0x1d0   : > { %723 = vmatmul.mubr.msk.f32.vlgmr.msra.gmra.mxu0 %vm310_vm12, %v286_v35 }
 0x290   : > { %v382_v37 = vpop.f32.mrf.mxu0 }
 0x291   : > { %v386_v38 = vsel %vm212_vm0, %v382_v37, 0.0  ;;  %v389_v39 = vmul.f32 %v382_v37, %v382_v37 }
 0x292   : > { %387 = vadd.xlane.f32.xlu0 %v386_v38  ;;  %v724_v40 = vpop.f32.mrf.mxu0 }
 0x293   : > { %v390_v41 = vsel %vm212_vm0, %v389_v39, 0.0 }
 0x294   : > { %391 = vadd.xlane.f32.xlu1 %v390_v41 }
 0x31b   : > { %v388_v42 = vpop.xlane.xlu0 %387 }
 0x31c   : > { %v393_v43 = vmul.f32 0.0625, %v388_v42 }
 0x31d   : > { %v392_v44 = vpop.xlane.xlu1 %391 }
 0x31e   : > { %v395_v45 = vmul.f32 %v393_v43, %v393_v43  ;;  %v394_v46 = vmul.f32 0.0625, %v392_v44  ;;  %v397_v49 = vsub.f32 %v382_v37, %v393_v43 }
 0x320   : > { %v396_v47 = vsub.f32 %v394_v46, %v395_v45 }
 0x322   : > { %v398_v48 = vadd.f32 1e-05, %v396_v47 }
 0x324   : > { %821 = vrsqrt.f32 %v398_v48 }
 0x331   : > { %v822_v50 = vpop.eup %821 }
 0x332   : > { %v400_v51 = vmul.f32 %v822_v50, %v397_v49 }
 0x334   : > { %v401_v52 = vmax.f32 %v400_v51, 0.0 }
 0x336   : > { %402 = vst.msk [vmem:[#allocation2 + $0x4] sm:$0xf] %vm212_vm0, %v401_v52  ;;  %416 = vrot.lane.b32.xlu1 %v401_v52, %s981_s25  ;;  %404 = vrot.lane.b32.xlu0 %v401_v52, %s979_s23 }
 0x33a   : > { %420 = vrot.lane.b32.xlu1 %v401_v52, %s980_s18  ;;  %408 = vrot.lane.b32.xlu0 %v401_v52, %s978_s20  ;;  %s909_s18 = sshll.u32 %s990_s16, 4  ;;  %s910_s18 = int_to_ptr.vmem [resolvable:$false] %s909_s18 }
 0x33b   : > { %s911_s24 = scalar_lea.vmem %s910_s18, 128  ;;  %p912_p4 = scmp.lt.s32.totalorder %s596_s17, %s910_s18 }
 0x33e   : > { %424 = vrot.lane.b32.xlu1 %v401_v52, %s982_s27  ;;  %412 = vrot.lane.b32.xlu0 %v401_v52, %s983_s28 }
 0x3a8   : > { %v417_v53 = vpop.permute.xlu1 %416  ;;  %v405_v54 = vpop.permute.xlu0 %404 }
 0x3a9   : > { %419 = vst.msk [vmem:[#allocation2 + $0x4] sm:$0xf] %vm233_vm3, %v417_v53 }
 0x3aa   : > { %407 = vst.msk [vmem:[#allocation2] sm:$0xf] %vm218_vm1, %v405_v54 }
 0x3ac   : > { %v421_v55 = vpop.permute.xlu1 %420  ;;  %v409_v56 = vpop.permute.xlu0 %408 }
 0x3ad   : > { %423 = vst.msk [vmem:[#allocation2 + $0x4] sm:$0xf] %vm238_vm4, %v421_v55 }
 0x3ae   : > { %411 = vst.msk [vmem:[#allocation2] sm:$0xf] %vm223_vm2, %v409_v56 }
 0x3b0   : > { %v425_v57 = vpop.permute.xlu1 %424  ;;  %v413_v58 = vpop.permute.xlu0 %412 }
 0x3b1   : > { %427 = vst.msk [vmem:[#allocation2 + $0x4] sm:$0xf] %vm243_vm5, %v425_v57 }
 0x3b2   : > { %415 = vst.msk [vmem:[#allocation2] sm:$0xf] %vm228_vm6, %v413_v58 }
 0x3b8   : > { %v429_v59 = vld [vmem:[#allocation2 + $0x4] sm:$0xf] }
 0x3b9   : > { %v428_v60 = vld [vmem:[#allocation2] sm:$0xff]  ;;  %459 = vrot.lane.b32.xlu0 %v429_v59, %s979_s23  ;;  %v449_v62 = vcombine.low %v429_v59, %v429_v59  ;;  %s905_s23 = scalar_lea.vmem %s596_s17, 64 }
 0x3ba   : > { %441 = vrot.lane.b32.xlu1 %v428_v60, %s983_s28  ;;  %v431_v61 = vcombine.high %v428_v60, %v428_v60  ;;  %v433_v63 = vcombine.low %v428_v60, %v428_v60  ;;  %p906_p13 = scmp.ne.s32.totalorder %s596_s17, %s905_s23  ;;  %p913_p6 = scmp.lt.s32.totalorder %s911_s24, %s905_s23 }
 0x3bc   : > { %p907_p1 = pnand %p906_p13, %p1300_p0  ;;  %p914_p8 = por %p913_p6, %p912_p4 }
 0x3bd   : > { %443 = vrot.lane.b32.xlu0 %v431_v61, %s983_s28 }
 0x3be   : > { %453 = vrot.lane.b32.xlu1 %v429_v59, %s978_s20  ;;  %s582_s20 = scalar_lea.sflag [#allocation5], %s1129_s22  ;;  %p908_p2 = pneg %p907_p1 }
 0x3c0   : > { %p915_p12 = pnand %p914_p8, %p908_p2 }
 0x3c1   : > { %456 = vrot.lane.b32.xlu0 %v449_v62, %s986_s5 }
 0x3c2   : > { %450 = vrot.lane.b32.xlu1 %v449_v62, %s985_s4 }
 0x3c5   : > { %434 = vrot.lane.b32.xlu0 %v433_v63, %s987_s6 }
 0x3c6   : > { %436 = vrot.lane.b32.xlu1 %v428_v60, %s987_s6 }
 0x42b   : > { %v460_v1 = vpop.permute.xlu0 %459 }
 0x42c   : > { %v442_v2 = vpop.permute.xlu1 %441  ;;  %482 = vrot.lane.b32.xlu0 %v460_v1, %s988_s7 }
 0x42f   : > { %v444_v4 = vpop.permute.xlu0 %443 }
 0x430   : > { %v454_v3 = vpop.permute.xlu1 %453  ;;  %v445_v5 = vsel %vm263_vm7, %v442_v2, %v444_v4 }
 0x433   : > { %v457_v7 = vpop.permute.xlu0 %456 }
 0x434   : > { %v451_v6 = vpop.permute.xlu1 %450  ;;  %v465_v9 = vsel %vm280_vm8, %v454_v3, %v457_v7 }
 0x435   : > { %v463_v8 = vsel %vm280_vm8, %v445_v5, %v451_v6  ;;  %480 = vrot.lane.b32.xlu1 %v465_v9, %s988_s7  ;;  %v464_v14 = vsel %vm280_vm8, %v444_v4, %v451_v6 }
 0x436   : > { %476 = vrot.lane.b32.xlu0 %v463_v8, %s988_s7 }
 0x437   : > { %v435_v12 = vpop.permute.xlu0 %434 }
 0x438   : > { %v437_v11 = vpop.permute.xlu1 %436 }
 0x439   : > { %v438_v13 = vsel %vm255_vm10, %v435_v12, %v437_v11  ;;  %478 = vrot.lane.b32.xlu1 %v464_v14, %s988_s7  ;;  %v462_v16 = vsel %vm280_vm8, %v431_v61, %v437_v11 }
 0x43a   : > { %v461_v15 = vsel %vm280_vm8, %v428_v60, %v438_v13 }
 0x43b   : > { %472 = vrot.lane.b32.xlu0 %v461_v15, %s988_s7 }
 0x43d   : > { %474 = vrot.lane.b32.xlu1 %v462_v16, %s988_s7 }
 0x49e   : > { %v483_v17 = vpop.permute.xlu0 %482 }
 0x49f   : > { %726 = vmatpush3.msk.msra.mxu1 %vm280_vm8, %v483_v17 }
 0x4a0   : > { %727 = vmatprep.subr.mxu1 %v984_v10 }
 0x4a7   : > { %v481_v18 = vpop.permute.xlu1 %480 }
 0x4a8   : > { %728 = vmatpush3.msra.mxu1 %v481_v18  ;;  %v477_v19 = vpop.permute.xlu0 %476 }
 0x4a9   : > { %729 = vmatprep.subr.mxu1 %v984_v10 }
 0x4ab   : > { %v479_v20 = vpop.permute.xlu1 %478 }
 0x4ac   : > { %v485_v21 = vsel %vm304_vm11, %v477_v19, %v479_v20 }
 0x4ad   : > { %730 = vmatpush3.msra.mxu1 %v485_v21  ;;  %v473_v22 = vpop.permute.xlu0 %472 }
 0x4ae   : > { %731 = vmatprep.subr.mxu1 %v984_v10 }
 0x4af   : > { %v475_v23 = vpop.permute.xlu1 %474 }
 0x4b0   : > { %v484_v25 = vsel %vm304_vm11, %v473_v22, %v475_v23 }
 0x4b1   : > { %732 = vmatpush3.msra.mxu1 %v484_v25 }
 0x4b2   : > { %734 = vmatmul.mubr.msk.f32.vlgmr.msra.gmra.mxu1 %vm310_vm12, %v466_v24 }
 0x572   : > { %v560_v26 = vpop.f32.mrf.mxu1 }
 0x573   : > { %v564_v27 = vsel %vm212_vm0, %v560_v26, 0.0  ;;  %v567_v28 = vmul.f32 %v560_v26, %v560_v26 }
 0x574   : > { %565 = vadd.xlane.f32.xlu0 %v564_v27  ;;  %v735_v29 = vpop.f32.mrf.mxu1 }
 0x575   : > { %v568_v30 = vsel %vm212_vm0, %v567_v28, 0.0 }
 0x576   : > { %569 = vadd.xlane.f32.xlu1 %v568_v30 }
 0x5fd   : > { %v566_v10 = vpop.xlane.xlu0 %565 }
 0x5fe   : > { %v571_v31 = vmul.f32 0.0625, %v566_v10 }
 0x5ff   : > { %v570_v32 = vpop.xlane.xlu1 %569 }
 0x600   : > { %v573_v33 = vmul.f32 %v571_v31, %v571_v31  ;;  %v572_v34 = vmul.f32 0.0625, %v570_v32  ;;  %v575_v37 = vsub.f32 %v560_v26, %v571_v31 }
 0x602   : > { %v574_v35 = vsub.f32 %v572_v34, %v573_v33 }
 0x604   : > { %v576_v36 = vadd.f32 1e-05, %v574_v35 }
 0x606   : > { %823 = vrsqrt.f32 %v576_v36 }
 0x613   : > { %v824_v38 = vpop.eup %823 }
 0x614   : > { %v578_v39 = vmul.f32 %v824_v38, %v575_v37 }
 0x616   : > { %v579_v40 = vadd.f32 %v578_v39, %v1143_v0 }
 0x618   : > { %580 = vst.msk [vmem:[%s210_s10] sm:$0xf] %vm212_vm0, %v579_v40 }
 0x619   : > { %918 = shalt.err (!%p915_p12)
}
 0x61a   : > { %s919_s25 = scalar_lea.hbm %s593_s30, 64  ;;  %s923_s28 = scalar_lea.hbm %s1284_s3, 128 }
 0x61b   : > { %p920_p3 = scmp.ne.s32.totalorder %s593_s30, %s919_s25  ;;  %p924_p5 = scmp.lt.s32.totalorder %s593_s30, %s1284_s3 }
 0x61c   : > { %p925_p9 = scmp.lt.s32.totalorder %s923_s28, %s919_s25 }
 0x61d   : > { %p921_p7 = pnand %p920_p3, %p1300_p0 }
 0x61e   : > { %p926_p11 = por %p925_p9, %p924_p5 }
 0x61f   : > { %p922_p10 = pneg %p921_p7 }
 0x621   : > { %p927_p13 = pnand %p926_p11, %p922_p10 }
 0x623   : > { %930 = shalt.err (!%p927_p13)
}
 0x624   : > { %746 = dma.vmem_to_hbm [thread:$0]  (%p1300_p0), %s596_s17, 64, %s593_s30, %s582_s20  }
 0x625 PF: > { %s607_s6 = sand.u32 1, %s961_s12   ;;  %p1301_p1 = scmp.ne.s32.totalorder %s1290_s19, 0 }
 0x626   : > { %p1302_p2 = scmp.ge.s32.totalorder %s973_s15, 2  ;;  %s608_s7 = scalar_lea.sflag [#allocation5], %s607_s6 }
 0x628   : > { %p760_p4 = pnand %p1302_p2, %p1301_p1 }
 0x62a   : > { %p761_p6 = pneg %p760_p4 }
 0x62c   : > { %956 = dma.done.wait (%p761_p6), %s608_s7, 64  }
 0x62d   : > { %958 = vsyncadd (%p761_p6), %s608_s7, 4294967232  ;;  %p17_p8 = scmp.ge.s32.totalorder %s1065_s26, 4   ;;  %s1303_s12 = smov %s965_s13 }
 0x62e   : > { %s1304_s13 = smov %s969_s14  ;;  %s1305_s14 = smov %s1092_s8 }
 0x62f   : > { %s1306_s15 = smov %s1065_s26  ;;  %19 = sbr.rel (!%p17_p8) target bundleno = 6 (0x6), region = 85 }
 0x634   :  { %613 = vsyncpa [#allocation4], 1 }
 0x635   :  { %615 = vsyncpa [#allocation4 + $0x1], 1 }
 0x636   :  { %616 = vsyncpa [#allocation7], 1 }
 0x637   :  { %617 = vsyncpa [#allocation5], 1 }
 0x638   :  { %619 = vsyncpa [#allocation5 + $0x1], 1 }

</bundles_post_ra>
